<compile_context>
chip_gen: v6e
topology: v6e:2x2x1
jax: 0.10.0
libtpu: 0.0.40
codegen_flags: <defaults>
</compile_context>

<pallas_src>
import jax
import jax.numpy as jnp
from jax.experimental import pallas as pl
from jax.experimental.pallas import tpu as pltpu


# ----------------------------------------------------------------------------
# Pallas kernel: multi-layer LSTM over the sequence (layer/time wavefront)
# + final Linear.  Everything is traced fully unrolled (T, n_layers static
# and tiny); all state is vreg-resident, no scratch buffers.
# ----------------------------------------------------------------------------
def _make_lstm_fc_kernel(n_layers: int, T: int, B: int, H: int, I_dim: int):
    G = 4 * H

    def kernel(*refs):
        # refs: x2d, [w_ihT, w_hhT, bias] * n_layers, w_fcT_pad, b_fc_pad, out
        x_ref = refs[0]
        idx = 1
        layer_refs = []
        for _ in range(n_layers):
            layer_refs.append((refs[idx], refs[idx + 1], refs[idx + 2]))
            idx += 3
        wfc_ref = refs[idx]
        bfc_ref = refs[idx + 1]
        out_ref = refs[idx + 2]

        # Load weights once as values (bf16), biases as f32.
        w_ih = [r[...] for (r, _, _) in layer_refs]            # (in_dim, 4H) bf16
        w_hh = [r[...] for (_, r, _) in layer_refs]            # (H, 4H)     bf16
        bias = [r[...] for (_, _, r) in layer_refs]            # (1, 4H)     f32
        # Hoist the per-step bias broadcast out of the unrolled loop.
        bias_b = [jnp.broadcast_to(b, (B, G)) for b in bias]
        cdtype = w_hh[0].dtype                                  # bf16 MXU operands

        # Hoisted layer-0 input projection + bias: one (T*B,I)@(I,4H) matmul.
        gx0 = (
            jnp.dot(x_ref[...], w_ih[0], preferred_element_type=jnp.float32)
            + bias[0]
        )                                                       # (T*B, 4H) f32

        def cell(gates, c_old):
            # Full-width nonlinearities (one sigmoid + one tanh push), then slice.
            sig = jax.nn.sigmoid(gates)
            tng = jnp.tanh(gates)
            i_g = sig[:, 0 * H:1 * H]
            f_g = sig[:, 1 * H:2 * H]
            g_g = tng[:, 2 * H:3 * H]
            o_g = sig[:, 3 * H:4 * H]
            c_new = f_g * c_old + i_g * g_g
            h_new = o_g * jnp.tanh(c_new)
            return h_new, c_new

        # Per-layer recurrent state (f32, matches torch.zeros h_0 / c_0).
        h = [jnp.zeros((B, H), jnp.float32) for _ in range(n_layers)]
        c = [jnp.zeros((B, H), jnp.float32) for _ in range(n_layers)]
        handoff = [None] * n_layers      # handoff[l] = layer l's h_t for layer l+1
        h_final = None

        # Wavefront: super-step s runs layer l at time t = s - l.  Layer l
        # consumes layer l-1's output produced at super-step s-1 (snapshot),
        # so within a super-step the layers' matmul chains are independent.
        for s in range(T + n_layers - 1):
            staged = list(handoff)
            for l in range(n_layers):
                t = s - l
                if not (0 <= t < T):
                    continue
                if l == 0:
                    gates = gx0[t * B:(t + 1) * B, :] + jnp.dot(
                        h[0].astype(cdtype), w_hh[0],
                        preferred_element_type=jnp.float32)
                else:
                    x_in = staged[l - 1]                       # layer l-1's h at time t
                    gates = (
                        jnp.dot(x_in.astype(cdtype), w_ih[l],
                                preferred_element_type=jnp.float32)
                        + jnp.dot(h[l].astype(cdtype), w_hh[l],
                                  preferred_element_type=jnp.float32)
                        + bias_b[l]
                    )
                h_new, c_new = cell(gates, c[l])
                h[l], c[l] = h_new, c_new
                handoff[l] = h_new
                if l == n_layers - 1 and t == T - 1:
                    h_final = h_new

        # output[:, -1, :] @ W_fc^T (lane-padded) + b_fc (lane-padded)
        out_ref[...] = (
            jnp.dot(h_final.astype(wfc_ref.dtype), wfc_ref[...],
                    preferred_element_type=jnp.float32)
            + bfc_ref[...]
        )

    return kernel


def lstm_model_forward(x, params):
    """x: (B, T, input_size) float32, batch_first like the PyTorch module."""
    B, T, I = x.shape
    layers = params["layers"]            # list of (w_ihT, w_hhT, bias_2d)
    n_layers = len(layers)
    H = layers[0][1].shape[0]
    O = params["w_fcT"].shape[1]
    O_PAD = 128                          # lane-dense output width

    # Time-major, flattened to 2-D in the wrapper (no in-kernel reshape).
    x2d = jnp.transpose(x, (1, 0, 2)).reshape(T * B, I).astype(jnp.bfloat16)

    flat_inputs = [x2d]
    for (wihT, whhT, b) in layers:
        flat_inputs += [wihT.astype(jnp.bfloat16),
                        whhT.astype(jnp.bfloat16),
                        b.astype(jnp.float32)]

    # Zero-pad the FC weight/bias to a lane-dense N; slice the result outside.
    w_fc_pad = jnp.zeros((H, O_PAD), jnp.bfloat16).at[:, :O].set(
        params["w_fcT"].astype(jnp.bfloat16))
    b_fc_pad = jnp.zeros((1, O_PAD), jnp.float32).at[:, :O].set(params["b_fc"])
    flat_inputs += [w_fc_pad, b_fc_pad]

    kernel = _make_lstm_fc_kernel(n_layers, T, B, H, I)
    vmem_spec = pl.BlockSpec(memory_space=pltpu.MemorySpace.VMEM)

    out_pad = pl.pallas_call(
        kernel,
        out_shape=jax.ShapeDtypeStruct((B, O_PAD), jnp.float32),
        in_specs=[vmem_spec] * len(flat_inputs),
        out_specs=vmem_spec,
    )(*flat_inputs)
    return out_pad[:, :O]


# ----------------------------------------------------------------------------
# Pure-JAX f32 reference (same math as the PyTorch module).
# ----------------------------------------------------------------------------
def lstm_model_reference(x, params):
    B, T, _ = x.shape
    h_seq = x
    for (wihT, whhT, b) in params["layers"]:
        H = whhT.shape[0]
        h = jnp.zeros((B, H), jnp.float32)
        c = jnp.zeros((B, H), jnp.float32)
        outs = []
        for t in range(T):
            gates = h_seq[:, t, :] @ wihT + h @ whhT + b
            i_g = jax.nn.sigmoid(gates[:, :H])
            f_g = jax.nn.sigmoid(gates[:, H:2 * H])
            g_g = jnp.tanh(gates[:, 2 * H:3 * H])
            o_g = jax.nn.sigmoid(gates[:, 3 * H:])
            c = f_g * c + i_g * g_g
            h = o_g * jnp.tanh(c)
            outs.append(h)
        h_seq = jnp.stack(outs, axis=1)
    return h_seq[:, -1, :] @ params["w_fcT"] + params["b_fc"]


# ----------------------------------------------------------------------------
# Deterministic parameter initialization (PyTorch-style uniform(-k, k)).
# ----------------------------------------------------------------------------
def init_params(key, input_size, hidden_size, output_size, num_layers):
    k = 1.0 / jnp.sqrt(hidden_size)
    layers = []
    for layer in range(num_layers):
        in_dim = input_size if layer == 0 else hidden_size
        key, k1, k2, k3, k4 = jax.random.split(key, 5)
        w_ih = jax.random.uniform(k1, (4 * hidden_size, in_dim), jnp.float32, -k, k)
        w_hh = jax.random.uniform(k2, (4 * hidden_size, hidden_size), jnp.float32, -k, k)
        b_ih = jax.random.uniform(k3, (4 * hidden_size,), jnp.float32, -k, k)
        b_hh = jax.random.uniform(k4, (4 * hidden_size,), jnp.float32, -k, k)
        # Pre-transpose weights and fold the two biases together (glue).
        layers.append((w_ih.T, w_hh.T, (b_ih + b_hh).reshape(1, -1)))
    key, k5, k6 = jax.random.split(key, 3)
    kf = 1.0 / jnp.sqrt(hidden_size)
    w_fc = jax.random.uniform(k5, (output_size, hidden_size), jnp.float32, -kf, kf)
    b_fc = jax.random.uniform(k6, (output_size,), jnp.float32, -kf, kf)
    return {"layers": layers, "w_fcT": w_fc.T, "b_fc": b_fc.reshape(1, -1)}


if __name__ == "__main__":
    # model_architecture
    INPUT_SIZE = 4
    HIDDEN_SIZE = 32
    OUTPUT_SIZE = 3
    NUM_LAYERS = 2
    BATCH = 2
    SEQ = 8

    key = jax.random.PRNGKey(0)
    key, xk = jax.random.split(key)
    x = jax.random.normal(xk, (BATCH, SEQ, INPUT_SIZE), jnp.float32)
    params = init_params(key, INPUT_SIZE, HIDDEN_SIZE, OUTPUT_SIZE, NUM_LAYERS)

    out = lstm_model_forward(x, params)
    out = jax.block_until_ready(out)

    ref = lstm_model_reference(x, params)
    assert out.shape == (BATCH, OUTPUT_SIZE)
    # bf16 MXU operands (f32 accumulation) -> loosened tolerance vs f32 reference.
    assert jnp.allclose(out, ref, rtol=3e-2, atol=3e-2), (out, ref)

    print("KERNEL_OK")
</pallas_src>

<mosaic_0001>
module attributes {stable_mosaic.version = 11 : i64} {
  func.func @kernel(%arg0: memref<16x4xbf16, #tpu.memory_space<vmem>>, %arg1: memref<4x128xbf16, #tpu.memory_space<vmem>>, %arg2: memref<32x128xbf16, #tpu.memory_space<vmem>>, %arg3: memref<1x128xf32, #tpu.memory_space<vmem>>, %arg4: memref<32x128xbf16, #tpu.memory_space<vmem>>, %arg5: memref<32x128xbf16, #tpu.memory_space<vmem>>, %arg6: memref<1x128xf32, #tpu.memory_space<vmem>>, %arg7: memref<32x128xbf16, #tpu.memory_space<vmem>>, %arg8: memref<1x128xf32, #tpu.memory_space<vmem>>, %arg9: memref<2x128xf32, #tpu.memory_space<vmem>>) attributes {dimension_semantics = [], scalar_prefetch = 0 : i64, scratch_operands = 0 : i64, tpu.core_type = #tpu.core_type<tc>} {
    %c0 = arith.constant 0 : index
    %c0_0 = arith.constant 0 : index
    %0 = vector.load %arg1[%c0, %c0_0] : memref<4x128xbf16, #tpu.memory_space<vmem>>, vector<4x128xbf16>
    %c0_1 = arith.constant 0 : index
    %c0_2 = arith.constant 0 : index
    %1 = vector.load %arg4[%c0_1, %c0_2] : memref<32x128xbf16, #tpu.memory_space<vmem>>, vector<32x128xbf16>
    %c0_3 = arith.constant 0 : index
    %c0_4 = arith.constant 0 : index
    %2 = vector.load %arg2[%c0_3, %c0_4] : memref<32x128xbf16, #tpu.memory_space<vmem>>, vector<32x128xbf16>
    %c0_5 = arith.constant 0 : index
    %c0_6 = arith.constant 0 : index
    %3 = vector.load %arg5[%c0_5, %c0_6] : memref<32x128xbf16, #tpu.memory_space<vmem>>, vector<32x128xbf16>
    %c0_7 = arith.constant 0 : index
    %c0_8 = arith.constant 0 : index
    %4 = vector.load %arg3[%c0_7, %c0_8] : memref<1x128xf32, #tpu.memory_space<vmem>>, vector<1x128xf32>
    %c0_9 = arith.constant 0 : index
    %c0_10 = arith.constant 0 : index
    %5 = vector.load %arg6[%c0_9, %c0_10] : memref<1x128xf32, #tpu.memory_space<vmem>>, vector<1x128xf32>
    %6 = vector.shape_cast %5 : vector<1x128xf32> to vector<1x128xf32>
    %7 = vector.broadcast %6 : vector<1x128xf32> to vector<2x128xf32>
    %c0_11 = arith.constant 0 : index
    %c0_12 = arith.constant 0 : index
    %8 = vector.load %arg0[%c0_11, %c0_12] : memref<16x4xbf16, #tpu.memory_space<vmem>>, vector<16x4xbf16>
    %cst = arith.constant dense<0.000000e+00> : vector<16x128xf32>
    %9 = tpu.matmul %8, %0, %cst {dimension_numbers = #tpu.dot_dimension_numbers<[1], [0], [0], [1], [0, 0, 1, 1], [], []>} : vector<16x4xbf16>, vector<4x128xbf16>, vector<16x128xf32> -> vector<16x128xf32>
    %10 = vector.broadcast %4 : vector<1x128xf32> to vector<16x128xf32>
    %11 = arith.addf %9, %10 : vector<16x128xf32>
    %cst_13 = arith.constant 0.000000e+00 : f32
    %12 = vector.broadcast %cst_13 : f32 to vector<2x32xf32>
    %cst_14 = arith.constant 0.000000e+00 : f32
    %13 = vector.broadcast %cst_14 : f32 to vector<2x32xf32>
    %cst_15 = arith.constant 0.000000e+00 : f32
    %14 = vector.broadcast %cst_15 : f32 to vector<2x32xf32>
    %cst_16 = arith.constant 0.000000e+00 : f32
    %15 = vector.broadcast %cst_16 : f32 to vector<2x32xf32>
    %16 = vector.extract_strided_slice %11 {offsets = [0, 0], sizes = [2, 128], strides = [1, 1]} : vector<16x128xf32> to vector<2x128xf32>
    %17 = arith.truncf %12 : vector<2x32xf32> to vector<2x32xbf16>
    %cst_17 = arith.constant dense<0.000000e+00> : vector<2x128xf32>
    %18 = tpu.matmul %17, %2, %cst_17 {dimension_numbers = #tpu.dot_dimension_numbers<[1], [0], [0], [1], [0, 0, 1, 1], [], []>} : vector<2x32xbf16>, vector<32x128xbf16>, vector<2x128xf32> -> vector<2x128xf32>
    %19 = arith.addf %16, %18 : vector<2x128xf32>
    %20 = arith.negf %19 : vector<2x128xf32>
    %21 = math.exp %20 : vector<2x128xf32>
    %cst_18 = arith.constant 1.000000e+00 : f32
    %22 = vector.broadcast %cst_18 : f32 to vector<2x128xf32>
    %23 = arith.addf %22, %21 : vector<2x128xf32>
    %24 = arith.divf %22, %23 : vector<2x128xf32>
    %25 = math.tanh %19 : vector<2x128xf32>
    %26 = vector.extract_strided_slice %24 {offsets = [0, 0], sizes = [2, 32], strides = [1, 1]} : vector<2x128xf32> to vector<2x32xf32>
    %27 = vector.extract_strided_slice %24 {offsets = [0, 32], sizes = [2, 32], strides = [1, 1]} : vector<2x128xf32> to vector<2x32xf32>
    %28 = vector.extract_strided_slice %25 {offsets = [0, 64], sizes = [2, 32], strides = [1, 1]} : vector<2x128xf32> to vector<2x32xf32>
    %29 = vector.extract_strided_slice %24 {offsets = [0, 96], sizes = [2, 32], strides = [1, 1]} : vector<2x128xf32> to vector<2x32xf32>
    %30 = arith.mulf %27, %14 : vector<2x32xf32>
    %31 = arith.mulf %26, %28 : vector<2x32xf32>
    %32 = arith.addf %30, %31 : vector<2x32xf32>
    %33 = math.tanh %32 : vector<2x32xf32>
    %34 = arith.mulf %29, %33 : vector<2x32xf32>
    %35 = vector.extract_strided_slice %11 {offsets = [2, 0], sizes = [2, 128], strides = [1, 1]} : vector<16x128xf32> to vector<2x128xf32>
    %36 = arith.truncf %34 : vector<2x32xf32> to vector<2x32xbf16>
    %cst_19 = arith.constant dense<0.000000e+00> : vector<2x128xf32>
    %37 = tpu.matmul %36, %2, %cst_19 {dimension_numbers = #tpu.dot_dimension_numbers<[1], [0], [0], [1], [0, 0, 1, 1], [], []>} : vector<2x32xbf16>, vector<32x128xbf16>, vector<2x128xf32> -> vector<2x128xf32>
    %38 = arith.addf %35, %37 : vector<2x128xf32>
    %39 = arith.negf %38 : vector<2x128xf32>
    %40 = math.exp %39 : vector<2x128xf32>
    %cst_20 = arith.constant 1.000000e+00 : f32
    %41 = vector.broadcast %cst_20 : f32 to vector<2x128xf32>
    %42 = arith.addf %41, %40 : vector<2x128xf32>
    %43 = arith.divf %41, %42 : vector<2x128xf32>
    %44 = math.tanh %38 : vector<2x128xf32>
    %45 = vector.extract_strided_slice %43 {offsets = [0, 0], sizes = [2, 32], strides = [1, 1]} : vector<2x128xf32> to vector<2x32xf32>
    %46 = vector.extract_strided_slice %43 {offsets = [0, 32], sizes = [2, 32], strides = [1, 1]} : vector<2x128xf32> to vector<2x32xf32>
    %47 = vector.extract_strided_slice %44 {offsets = [0, 64], sizes = [2, 32], strides = [1, 1]} : vector<2x128xf32> to vector<2x32xf32>
    %48 = vector.extract_strided_slice %43 {offsets = [0, 96], sizes = [2, 32], strides = [1, 1]} : vector<2x128xf32> to vector<2x32xf32>
    %49 = arith.mulf %46, %32 : vector<2x32xf32>
    %50 = arith.mulf %45, %47 : vector<2x32xf32>
    %51 = arith.addf %49, %50 : vector<2x32xf32>
    %52 = math.tanh %51 : vector<2x32xf32>
    %53 = arith.mulf %48, %52 : vector<2x32xf32>
    %54 = arith.truncf %34 : vector<2x32xf32> to vector<2x32xbf16>
    %cst_21 = arith.constant dense<0.000000e+00> : vector<2x128xf32>
    %55 = tpu.matmul %54, %1, %cst_21 {dimension_numbers = #tpu.dot_dimension_numbers<[1], [0], [0], [1], [0, 0, 1, 1], [], []>} : vector<2x32xbf16>, vector<32x128xbf16>, vector<2x128xf32> -> vector<2x128xf32>
    %56 = arith.truncf %13 : vector<2x32xf32> to vector<2x32xbf16>
    %cst_22 = arith.constant dense<0.000000e+00> : vector<2x128xf32>
    %57 = tpu.matmul %56, %3, %cst_22 {dimension_numbers = #tpu.dot_dimension_numbers<[1], [0], [0], [1], [0, 0, 1, 1], [], []>} : vector<2x32xbf16>, vector<32x128xbf16>, vector<2x128xf32> -> vector<2x128xf32>
    %58 = arith.addf %55, %57 : vector<2x128xf32>
    %59 = arith.addf %58, %7 : vector<2x128xf32>
    %60 = arith.negf %59 : vector<2x128xf32>
    %61 = math.exp %60 : vector<2x128xf32>
    %cst_23 = arith.constant 1.000000e+00 : f32
    %62 = vector.broadcast %cst_23 : f32 to vector<2x128xf32>
    %63 = arith.addf %62, %61 : vector<2x128xf32>
    %64 = arith.divf %62, %63 : vector<2x128xf32>
    %65 = math.tanh %59 : vector<2x128xf32>
    %66 = vector.extract_strided_slice %64 {offsets = [0, 0], sizes = [2, 32], strides = [1, 1]} : vector<2x128xf32> to vector<2x32xf32>
    %67 = vector.extract_strided_slice %64 {offsets = [0, 32], sizes = [2, 32], strides = [1, 1]} : vector<2x128xf32> to vector<2x32xf32>
    %68 = vector.extract_strided_slice %65 {offsets = [0, 64], sizes = [2, 32], strides = [1, 1]} : vector<2x128xf32> to vector<2x32xf32>
    %69 = vector.extract_strided_slice %64 {offsets = [0, 96], sizes = [2, 32], strides = [1, 1]} : vector<2x128xf32> to vector<2x32xf32>
    %70 = arith.mulf %67, %15 : vector<2x32xf32>
    %71 = arith.mulf %66, %68 : vector<2x32xf32>
    %72 = arith.addf %70, %71 : vector<2x32xf32>
    %73 = math.tanh %72 : vector<2x32xf32>
    %74 = arith.mulf %69, %73 : vector<2x32xf32>
    %75 = vector.extract_strided_slice %11 {offsets = [4, 0], sizes = [2, 128], strides = [1, 1]} : vector<16x128xf32> to vector<2x128xf32>
    %76 = arith.truncf %53 : vector<2x32xf32> to vector<2x32xbf16>
    %cst_24 = arith.constant dense<0.000000e+00> : vector<2x128xf32>
    %77 = tpu.matmul %76, %2, %cst_24 {dimension_numbers = #tpu.dot_dimension_numbers<[1], [0], [0], [1], [0, 0, 1, 1], [], []>} : vector<2x32xbf16>, vector<32x128xbf16>, vector<2x128xf32> -> vector<2x128xf32>
    %78 = arith.addf %75, %77 : vector<2x128xf32>
    %79 = arith.negf %78 : vector<2x128xf32>
    %80 = math.exp %79 : vector<2x128xf32>
    %cst_25 = arith.constant 1.000000e+00 : f32
    %81 = vector.broadcast %cst_25 : f32 to vector<2x128xf32>
    %82 = arith.addf %81, %80 : vector<2x128xf32>
    %83 = arith.divf %81, %82 : vector<2x128xf32>
    %84 = math.tanh %78 : vector<2x128xf32>
    %85 = vector.extract_strided_slice %83 {offsets = [0, 0], sizes = [2, 32], strides = [1, 1]} : vector<2x128xf32> to vector<2x32xf32>
    %86 = vector.extract_strided_slice %83 {offsets = [0, 32], sizes = [2, 32], strides = [1, 1]} : vector<2x128xf32> to vector<2x32xf32>
    %87 = vector.extract_strided_slice %84 {offsets = [0, 64], sizes = [2, 32], strides = [1, 1]} : vector<2x128xf32> to vector<2x32xf32>
    %88 = vector.extract_strided_slice %83 {offsets = [0, 96], sizes = [2, 32], strides = [1, 1]} : vector<2x128xf32> to vector<2x32xf32>
    %89 = arith.mulf %86, %51 : vector<2x32xf32>
    %90 = arith.mulf %85, %87 : vector<2x32xf32>
    %91 = arith.addf %89, %90 : vector<2x32xf32>
    %92 = math.tanh %91 : vector<2x32xf32>
    %93 = arith.mulf %88, %92 : vector<2x32xf32>
    %94 = arith.truncf %53 : vector<2x32xf32> to vector<2x32xbf16>
    %cst_26 = arith.constant dense<0.000000e+00> : vector<2x128xf32>
    %95 = tpu.matmul %94, %1, %cst_26 {dimension_numbers = #tpu.dot_dimension_numbers<[1], [0], [0], [1], [0, 0, 1, 1], [], []>} : vector<2x32xbf16>, vector<32x128xbf16>, vector<2x128xf32> -> vector<2x128xf32>
    %96 = arith.truncf %74 : vector<2x32xf32> to vector<2x32xbf16>
    %cst_27 = arith.constant dense<0.000000e+00> : vector<2x128xf32>
    %97 = tpu.matmul %96, %3, %cst_27 {dimension_numbers = #tpu.dot_dimension_numbers<[1], [0], [0], [1], [0, 0, 1, 1], [], []>} : vector<2x32xbf16>, vector<32x128xbf16>, vector<2x128xf32> -> vector<2x128xf32>
    %98 = arith.addf %95, %97 : vector<2x128xf32>
    %99 = arith.addf %98, %7 : vector<2x128xf32>
    %100 = arith.negf %99 : vector<2x128xf32>
    %101 = math.exp %100 : vector<2x128xf32>
    %cst_28 = arith.constant 1.000000e+00 : f32
    %102 = vector.broadcast %cst_28 : f32 to vector<2x128xf32>
    %103 = arith.addf %102, %101 : vector<2x128xf32>
    %104 = arith.divf %102, %103 : vector<2x128xf32>
    %105 = math.tanh %99 : vector<2x128xf32>
    %106 = vector.extract_strided_slice %104 {offsets = [0, 0], sizes = [2, 32], strides = [1, 1]} : vector<2x128xf32> to vector<2x32xf32>
    %107 = vector.extract_strided_slice %104 {offsets = [0, 32], sizes = [2, 32], strides = [1, 1]} : vector<2x128xf32> to vector<2x32xf32>
    %108 = vector.extract_strided_slice %105 {offsets = [0, 64], sizes = [2, 32], strides = [1, 1]} : vector<2x128xf32> to vector<2x32xf32>
    %109 = vector.extract_strided_slice %104 {offsets = [0, 96], sizes = [2, 32], strides = [1, 1]} : vector<2x128xf32> to vector<2x32xf32>
    %110 = arith.mulf %107, %72 : vector<2x32xf32>
    %111 = arith.mulf %106, %108 : vector<2x32xf32>
    %112 = arith.addf %110, %111 : vector<2x32xf32>
    %113 = math.tanh %112 : vector<2x32xf32>
    %114 = arith.mulf %109, %113 : vector<2x32xf32>
    %115 = vector.extract_strided_slice %11 {offsets = [6, 0], sizes = [2, 128], strides = [1, 1]} : vector<16x128xf32> to vector<2x128xf32>
    %116 = arith.truncf %93 : vector<2x32xf32> to vector<2x32xbf16>
    %cst_29 = arith.constant dense<0.000000e+00> : vector<2x128xf32>
    %117 = tpu.matmul %116, %2, %cst_29 {dimension_numbers = #tpu.dot_dimension_numbers<[1], [0], [0], [1], [0, 0, 1, 1], [], []>} : vector<2x32xbf16>, vector<32x128xbf16>, vector<2x128xf32> -> vector<2x128xf32>
    %118 = arith.addf %115, %117 : vector<2x128xf32>
    %119 = arith.negf %118 : vector<2x128xf32>
    %120 = math.exp %119 : vector<2x128xf32>
    %cst_30 = arith.constant 1.000000e+00 : f32
    %121 = vector.broadcast %cst_30 : f32 to vector<2x128xf32>
    %122 = arith.addf %121, %120 : vector<2x128xf32>
    %123 = arith.divf %121, %122 : vector<2x128xf32>
    %124 = math.tanh %118 : vector<2x128xf32>
    %125 = vector.extract_strided_slice %123 {offsets = [0, 0], sizes = [2, 32], strides = [1, 1]} : vector<2x128xf32> to vector<2x32xf32>
    %126 = vector.extract_strided_slice %123 {offsets = [0, 32], sizes = [2, 32], strides = [1, 1]} : vector<2x128xf32> to vector<2x32xf32>
    %127 = vector.extract_strided_slice %124 {offsets = [0, 64], sizes = [2, 32], strides = [1, 1]} : vector<2x128xf32> to vector<2x32xf32>
    %128 = vector.extract_strided_slice %123 {offsets = [0, 96], sizes = [2, 32], strides = [1, 1]} : vector<2x128xf32> to vector<2x32xf32>
    %129 = arith.mulf %126, %91 : vector<2x32xf32>
    %130 = arith.mulf %125, %127 : vector<2x32xf32>
    %131 = arith.addf %129, %130 : vector<2x32xf32>
    %132 = math.tanh %131 : vector<2x32xf32>
    %133 = arith.mulf %128, %132 : vector<2x32xf32>
    %134 = arith.truncf %93 : vector<2x32xf32> to vector<2x32xbf16>
    %cst_31 = arith.constant dense<0.000000e+00> : vector<2x128xf32>
    %135 = tpu.matmul %134, %1, %cst_31 {dimension_numbers = #tpu.dot_dimension_numbers<[1], [0], [0], [1], [0, 0, 1, 1], [], []>} : vector<2x32xbf16>, vector<32x128xbf16>, vector<2x128xf32> -> vector<2x128xf32>
    %136 = arith.truncf %114 : vector<2x32xf32> to vector<2x32xbf16>
    %cst_32 = arith.constant dense<0.000000e+00> : vector<2x128xf32>
    %137 = tpu.matmul %136, %3, %cst_32 {dimension_numbers = #tpu.dot_dimension_numbers<[1], [0], [0], [1], [0, 0, 1, 1], [], []>} : vector<2x32xbf16>, vector<32x128xbf16>, vector<2x128xf32> -> vector<2x128xf32>
    %138 = arith.addf %135, %137 : vector<2x128xf32>
    %139 = arith.addf %138, %7 : vector<2x128xf32>
    %140 = arith.negf %139 : vector<2x128xf32>
    %141 = math.exp %140 : vector<2x128xf32>
    %cst_33 = arith.constant 1.000000e+00 : f32
    %142 = vector.broadcast %cst_33 : f32 to vector<2x128xf32>
    %143 = arith.addf %142, %141 : vector<2x128xf32>
    %144 = arith.divf %142, %143 : vector<2x128xf32>
    %145 = math.tanh %139 : vector<2x128xf32>
    %146 = vector.extract_strided_slice %144 {offsets = [0, 0], sizes = [2, 32], strides = [1, 1]} : vector<2x128xf32> to vector<2x32xf32>
    %147 = vector.extract_strided_slice %144 {offsets = [0, 32], sizes = [2, 32], strides = [1, 1]} : vector<2x128xf32> to vector<2x32xf32>
    %148 = vector.extract_strided_slice %145 {offsets = [0, 64], sizes = [2, 32], strides = [1, 1]} : vector<2x128xf32> to vector<2x32xf32>
    %149 = vector.extract_strided_slice %144 {offsets = [0, 96], sizes = [2, 32], strides = [1, 1]} : vector<2x128xf32> to vector<2x32xf32>
    %150 = arith.mulf %147, %112 : vector<2x32xf32>
    %151 = arith.mulf %146, %148 : vector<2x32xf32>
    %152 = arith.addf %150, %151 : vector<2x32xf32>
    %153 = math.tanh %152 : vector<2x32xf32>
    %154 = arith.mulf %149, %153 : vector<2x32xf32>
    %155 = vector.extract_strided_slice %11 {offsets = [8, 0], sizes = [2, 128], strides = [1, 1]} : vector<16x128xf32> to vector<2x128xf32>
    %156 = arith.truncf %133 : vector<2x32xf32> to vector<2x32xbf16>
    %cst_34 = arith.constant dense<0.000000e+00> : vector<2x128xf32>
    %157 = tpu.matmul %156, %2, %cst_34 {dimension_numbers = #tpu.dot_dimension_numbers<[1], [0], [0], [1], [0, 0, 1, 1], [], []>} : vector<2x32xbf16>, vector<32x128xbf16>, vector<2x128xf32> -> vector<2x128xf32>
    %158 = arith.addf %155, %157 : vector<2x128xf32>
    %159 = arith.negf %158 : vector<2x128xf32>
    %160 = math.exp %159 : vector<2x128xf32>
    %cst_35 = arith.constant 1.000000e+00 : f32
    %161 = vector.broadcast %cst_35 : f32 to vector<2x128xf32>
    %162 = arith.addf %161, %160 : vector<2x128xf32>
    %163 = arith.divf %161, %162 : vector<2x128xf32>
    %164 = math.tanh %158 : vector<2x128xf32>
    %165 = vector.extract_strided_slice %163 {offsets = [0, 0], sizes = [2, 32], strides = [1, 1]} : vector<2x128xf32> to vector<2x32xf32>
    %166 = vector.extract_strided_slice %163 {offsets = [0, 32], sizes = [2, 32], strides = [1, 1]} : vector<2x128xf32> to vector<2x32xf32>
    %167 = vector.extract_strided_slice %164 {offsets = [0, 64], sizes = [2, 32], strides = [1, 1]} : vector<2x128xf32> to vector<2x32xf32>
    %168 = vector.extract_strided_slice %163 {offsets = [0, 96], sizes = [2, 32], strides = [1, 1]} : vector<2x128xf32> to vector<2x32xf32>
    %169 = arith.mulf %166, %131 : vector<2x32xf32>
    %170 = arith.mulf %165, %167 : vector<2x32xf32>
    %171 = arith.addf %169, %170 : vector<2x32xf32>
    %172 = math.tanh %171 : vector<2x32xf32>
    %173 = arith.mulf %168, %172 : vector<2x32xf32>
    %174 = arith.truncf %133 : vector<2x32xf32> to vector<2x32xbf16>
    %cst_36 = arith.constant dense<0.000000e+00> : vector<2x128xf32>
    %175 = tpu.matmul %174, %1, %cst_36 {dimension_numbers = #tpu.dot_dimension_numbers<[1], [0], [0], [1], [0, 0, 1, 1], [], []>} : vector<2x32xbf16>, vector<32x128xbf16>, vector<2x128xf32> -> vector<2x128xf32>
    %176 = arith.truncf %154 : vector<2x32xf32> to vector<2x32xbf16>
    %cst_37 = arith.constant dense<0.000000e+00> : vector<2x128xf32>
    %177 = tpu.matmul %176, %3, %cst_37 {dimension_numbers = #tpu.dot_dimension_numbers<[1], [0], [0], [1], [0, 0, 1, 1], [], []>} : vector<2x32xbf16>, vector<32x128xbf16>, vector<2x128xf32> -> vector<2x128xf32>
    %178 = arith.addf %175, %177 : vector<2x128xf32>
    %179 = arith.addf %178, %7 : vector<2x128xf32>
    %180 = arith.negf %179 : vector<2x128xf32>
    %181 = math.exp %180 : vector<2x128xf32>
    %cst_38 = arith.constant 1.000000e+00 : f32
    %182 = vector.broadcast %cst_38 : f32 to vector<2x128xf32>
    %183 = arith.addf %182, %181 : vector<2x128xf32>
    %184 = arith.divf %182, %183 : vector<2x128xf32>
    %185 = math.tanh %179 : vector<2x128xf32>
    %186 = vector.extract_strided_slice %184 {offsets = [0, 0], sizes = [2, 32], strides = [1, 1]} : vector<2x128xf32> to vector<2x32xf32>
    %187 = vector.extract_strided_slice %184 {offsets = [0, 32], sizes = [2, 32], strides = [1, 1]} : vector<2x128xf32> to vector<2x32xf32>
    %188 = vector.extract_strided_slice %185 {offsets = [0, 64], sizes = [2, 32], strides = [1, 1]} : vector<2x128xf32> to vector<2x32xf32>
    %189 = vector.extract_strided_slice %184 {offsets = [0, 96], sizes = [2, 32], strides = [1, 1]} : vector<2x128xf32> to vector<2x32xf32>
    %190 = arith.mulf %187, %152 : vector<2x32xf32>
    %191 = arith.mulf %186, %188 : vector<2x32xf32>
    %192 = arith.addf %190, %191 : vector<2x32xf32>
    %193 = math.tanh %192 : vector<2x32xf32>
    %194 = arith.mulf %189, %193 : vector<2x32xf32>
    %195 = vector.extract_strided_slice %11 {offsets = [10, 0], sizes = [2, 128], strides = [1, 1]} : vector<16x128xf32> to vector<2x128xf32>
    %196 = arith.truncf %173 : vector<2x32xf32> to vector<2x32xbf16>
    %cst_39 = arith.constant dense<0.000000e+00> : vector<2x128xf32>
    %197 = tpu.matmul %196, %2, %cst_39 {dimension_numbers = #tpu.dot_dimension_numbers<[1], [0], [0], [1], [0, 0, 1, 1], [], []>} : vector<2x32xbf16>, vector<32x128xbf16>, vector<2x128xf32> -> vector<2x128xf32>
    %198 = arith.addf %195, %197 : vector<2x128xf32>
    %199 = arith.negf %198 : vector<2x128xf32>
    %200 = math.exp %199 : vector<2x128xf32>
    %cst_40 = arith.constant 1.000000e+00 : f32
    %201 = vector.broadcast %cst_40 : f32 to vector<2x128xf32>
    %202 = arith.addf %201, %200 : vector<2x128xf32>
    %203 = arith.divf %201, %202 : vector<2x128xf32>
    %204 = math.tanh %198 : vector<2x128xf32>
    %205 = vector.extract_strided_slice %203 {offsets = [0, 0], sizes = [2, 32], strides = [1, 1]} : vector<2x128xf32> to vector<2x32xf32>
    %206 = vector.extract_strided_slice %203 {offsets = [0, 32], sizes = [2, 32], strides = [1, 1]} : vector<2x128xf32> to vector<2x32xf32>
    %207 = vector.extract_strided_slice %204 {offsets = [0, 64], sizes = [2, 32], strides = [1, 1]} : vector<2x128xf32> to vector<2x32xf32>
    %208 = vector.extract_strided_slice %203 {offsets = [0, 96], sizes = [2, 32], strides = [1, 1]} : vector<2x128xf32> to vector<2x32xf32>
    %209 = arith.mulf %206, %171 : vector<2x32xf32>
    %210 = arith.mulf %205, %207 : vector<2x32xf32>
    %211 = arith.addf %209, %210 : vector<2x32xf32>
    %212 = math.tanh %211 : vector<2x32xf32>
    %213 = arith.mulf %208, %212 : vector<2x32xf32>
    %214 = arith.truncf %173 : vector<2x32xf32> to vector<2x32xbf16>
    %cst_41 = arith.constant dense<0.000000e+00> : vector<2x128xf32>
    %215 = tpu.matmul %214, %1, %cst_41 {dimension_numbers = #tpu.dot_dimension_numbers<[1], [0], [0], [1], [0, 0, 1, 1], [], []>} : vector<2x32xbf16>, vector<32x128xbf16>, vector<2x128xf32> -> vector<2x128xf32>
    %216 = arith.truncf %194 : vector<2x32xf32> to vector<2x32xbf16>
    %cst_42 = arith.constant dense<0.000000e+00> : vector<2x128xf32>
    %217 = tpu.matmul %216, %3, %cst_42 {dimension_numbers = #tpu.dot_dimension_numbers<[1], [0], [0], [1], [0, 0, 1, 1], [], []>} : vector<2x32xbf16>, vector<32x128xbf16>, vector<2x128xf32> -> vector<2x128xf32>
    %218 = arith.addf %215, %217 : vector<2x128xf32>
    %219 = arith.addf %218, %7 : vector<2x128xf32>
    %220 = arith.negf %219 : vector<2x128xf32>
    %221 = math.exp %220 : vector<2x128xf32>
    %cst_43 = arith.constant 1.000000e+00 : f32
    %222 = vector.broadcast %cst_43 : f32 to vector<2x128xf32>
    %223 = arith.addf %222, %221 : vector<2x128xf32>
    %224 = arith.divf %222, %223 : vector<2x128xf32>
    %225 = math.tanh %219 : vector<2x128xf32>
    %226 = vector.extract_strided_slice %224 {offsets = [0, 0], sizes = [2, 32], strides = [1, 1]} : vector<2x128xf32> to vector<2x32xf32>
    %227 = vector.extract_strided_slice %224 {offsets = [0, 32], sizes = [2, 32], strides = [1, 1]} : vector<2x128xf32> to vector<2x32xf32>
    %228 = vector.extract_strided_slice %225 {offsets = [0, 64], sizes = [2, 32], strides = [1, 1]} : vector<2x128xf32> to vector<2x32xf32>
    %229 = vector.extract_strided_slice %224 {offsets = [0, 96], sizes = [2, 32], strides = [1, 1]} : vector<2x128xf32> to vector<2x32xf32>
    %230 = arith.mulf %227, %192 : vector<2x32xf32>
    %231 = arith.mulf %226, %228 : vector<2x32xf32>
    %232 = arith.addf %230, %231 : vector<2x32xf32>
    %233 = math.tanh %232 : vector<2x32xf32>
    %234 = arith.mulf %229, %233 : vector<2x32xf32>
    %235 = vector.extract_strided_slice %11 {offsets = [12, 0], sizes = [2, 128], strides = [1, 1]} : vector<16x128xf32> to vector<2x128xf32>
    %236 = arith.truncf %213 : vector<2x32xf32> to vector<2x32xbf16>
    %cst_44 = arith.constant dense<0.000000e+00> : vector<2x128xf32>
    %237 = tpu.matmul %236, %2, %cst_44 {dimension_numbers = #tpu.dot_dimension_numbers<[1], [0], [0], [1], [0, 0, 1, 1], [], []>} : vector<2x32xbf16>, vector<32x128xbf16>, vector<2x128xf32> -> vector<2x128xf32>
    %238 = arith.addf %235, %237 : vector<2x128xf32>
    %239 = arith.negf %238 : vector<2x128xf32>
    %240 = math.exp %239 : vector<2x128xf32>
    %cst_45 = arith.constant 1.000000e+00 : f32
    %241 = vector.broadcast %cst_45 : f32 to vector<2x128xf32>
    %242 = arith.addf %241, %240 : vector<2x128xf32>
    %243 = arith.divf %241, %242 : vector<2x128xf32>
    %244 = math.tanh %238 : vector<2x128xf32>
    %245 = vector.extract_strided_slice %243 {offsets = [0, 0], sizes = [2, 32], strides = [1, 1]} : vector<2x128xf32> to vector<2x32xf32>
    %246 = vector.extract_strided_slice %243 {offsets = [0, 32], sizes = [2, 32], strides = [1, 1]} : vector<2x128xf32> to vector<2x32xf32>
    %247 = vector.extract_strided_slice %244 {offsets = [0, 64], sizes = [2, 32], strides = [1, 1]} : vector<2x128xf32> to vector<2x32xf32>
    %248 = vector.extract_strided_slice %243 {offsets = [0, 96], sizes = [2, 32], strides = [1, 1]} : vector<2x128xf32> to vector<2x32xf32>
    %249 = arith.mulf %246, %211 : vector<2x32xf32>
    %250 = arith.mulf %245, %247 : vector<2x32xf32>
    %251 = arith.addf %249, %250 : vector<2x32xf32>
    %252 = math.tanh %251 : vector<2x32xf32>
    %253 = arith.mulf %248, %252 : vector<2x32xf32>
    %254 = arith.truncf %213 : vector<2x32xf32> to vector<2x32xbf16>
    %cst_46 = arith.constant dense<0.000000e+00> : vector<2x128xf32>
    %255 = tpu.matmul %254, %1, %cst_46 {dimension_numbers = #tpu.dot_dimension_numbers<[1], [0], [0], [1], [0, 0, 1, 1], [], []>} : vector<2x32xbf16>, vector<32x128xbf16>, vector<2x128xf32> -> vector<2x128xf32>
    %256 = arith.truncf %234 : vector<2x32xf32> to vector<2x32xbf16>
    %cst_47 = arith.constant dense<0.000000e+00> : vector<2x128xf32>
    %257 = tpu.matmul %256, %3, %cst_47 {dimension_numbers = #tpu.dot_dimension_numbers<[1], [0], [0], [1], [0, 0, 1, 1], [], []>} : vector<2x32xbf16>, vector<32x128xbf16>, vector<2x128xf32> -> vector<2x128xf32>
    %258 = arith.addf %255, %257 : vector<2x128xf32>
    %259 = arith.addf %258, %7 : vector<2x128xf32>
    %260 = arith.negf %259 : vector<2x128xf32>
    %261 = math.exp %260 : vector<2x128xf32>
    %cst_48 = arith.constant 1.000000e+00 : f32
    %262 = vector.broadcast %cst_48 : f32 to vector<2x128xf32>
    %263 = arith.addf %262, %261 : vector<2x128xf32>
    %264 = arith.divf %262, %263 : vector<2x128xf32>
    %265 = math.tanh %259 : vector<2x128xf32>
    %266 = vector.extract_strided_slice %264 {offsets = [0, 0], sizes = [2, 32], strides = [1, 1]} : vector<2x128xf32> to vector<2x32xf32>
    %267 = vector.extract_strided_slice %264 {offsets = [0, 32], sizes = [2, 32], strides = [1, 1]} : vector<2x128xf32> to vector<2x32xf32>
    %268 = vector.extract_strided_slice %265 {offsets = [0, 64], sizes = [2, 32], strides = [1, 1]} : vector<2x128xf32> to vector<2x32xf32>
    %269 = vector.extract_strided_slice %264 {offsets = [0, 96], sizes = [2, 32], strides = [1, 1]} : vector<2x128xf32> to vector<2x32xf32>
    %270 = arith.mulf %267, %232 : vector<2x32xf32>
    %271 = arith.mulf %266, %268 : vector<2x32xf32>
    %272 = arith.addf %270, %271 : vector<2x32xf32>
    %273 = math.tanh %272 : vector<2x32xf32>
    %274 = arith.mulf %269, %273 : vector<2x32xf32>
    %275 = vector.extract_strided_slice %11 {offsets = [14, 0], sizes = [2, 128], strides = [1, 1]} : vector<16x128xf32> to vector<2x128xf32>
    %276 = arith.truncf %253 : vector<2x32xf32> to vector<2x32xbf16>
    %cst_49 = arith.constant dense<0.000000e+00> : vector<2x128xf32>
    %277 = tpu.matmul %276, %2, %cst_49 {dimension_numbers = #tpu.dot_dimension_numbers<[1], [0], [0], [1], [0, 0, 1, 1], [], []>} : vector<2x32xbf16>, vector<32x128xbf16>, vector<2x128xf32> -> vector<2x128xf32>
    %278 = arith.addf %275, %277 : vector<2x128xf32>
    %279 = arith.negf %278 : vector<2x128xf32>
    %280 = math.exp %279 : vector<2x128xf32>
    %cst_50 = arith.constant 1.000000e+00 : f32
    %281 = vector.broadcast %cst_50 : f32 to vector<2x128xf32>
    %282 = arith.addf %281, %280 : vector<2x128xf32>
    %283 = arith.divf %281, %282 : vector<2x128xf32>
    %284 = math.tanh %278 : vector<2x128xf32>
    %285 = vector.extract_strided_slice %283 {offsets = [0, 0], sizes = [2, 32], strides = [1, 1]} : vector<2x128xf32> to vector<2x32xf32>
    %286 = vector.extract_strided_slice %283 {offsets = [0, 32], sizes = [2, 32], strides = [1, 1]} : vector<2x128xf32> to vector<2x32xf32>
    %287 = vector.extract_strided_slice %284 {offsets = [0, 64], sizes = [2, 32], strides = [1, 1]} : vector<2x128xf32> to vector<2x32xf32>
    %288 = vector.extract_strided_slice %283 {offsets = [0, 96], sizes = [2, 32], strides = [1, 1]} : vector<2x128xf32> to vector<2x32xf32>
    %289 = arith.mulf %286, %251 : vector<2x32xf32>
    %290 = arith.mulf %285, %287 : vector<2x32xf32>
    %291 = arith.addf %289, %290 : vector<2x32xf32>
    %292 = math.tanh %291 : vector<2x32xf32>
    %293 = arith.mulf %288, %292 : vector<2x32xf32>
    %294 = arith.truncf %253 : vector<2x32xf32> to vector<2x32xbf16>
    %cst_51 = arith.constant dense<0.000000e+00> : vector<2x128xf32>
    %295 = tpu.matmul %294, %1, %cst_51 {dimension_numbers = #tpu.dot_dimension_numbers<[1], [0], [0], [1], [0, 0, 1, 1], [], []>} : vector<2x32xbf16>, vector<32x128xbf16>, vector<2x128xf32> -> vector<2x128xf32>
    %296 = arith.truncf %274 : vector<2x32xf32> to vector<2x32xbf16>
    %cst_52 = arith.constant dense<0.000000e+00> : vector<2x128xf32>
    %297 = tpu.matmul %296, %3, %cst_52 {dimension_numbers = #tpu.dot_dimension_numbers<[1], [0], [0], [1], [0, 0, 1, 1], [], []>} : vector<2x32xbf16>, vector<32x128xbf16>, vector<2x128xf32> -> vector<2x128xf32>
    %298 = arith.addf %295, %297 : vector<2x128xf32>
    %299 = arith.addf %298, %7 : vector<2x128xf32>
    %300 = arith.negf %299 : vector<2x128xf32>
    %301 = math.exp %300 : vector<2x128xf32>
    %cst_53 = arith.constant 1.000000e+00 : f32
    %302 = vector.broadcast %cst_53 : f32 to vector<2x128xf32>
    %303 = arith.addf %302, %301 : vector<2x128xf32>
    %304 = arith.divf %302, %303 : vector<2x128xf32>
    %305 = math.tanh %299 : vector<2x128xf32>
    %306 = vector.extract_strided_slice %304 {offsets = [0, 0], sizes = [2, 32], strides = [1, 1]} : vector<2x128xf32> to vector<2x32xf32>
    %307 = vector.extract_strided_slice %304 {offsets = [0, 32], sizes = [2, 32], strides = [1, 1]} : vector<2x128xf32> to vector<2x32xf32>
    %308 = vector.extract_strided_slice %305 {offsets = [0, 64], sizes = [2, 32], strides = [1, 1]} : vector<2x128xf32> to vector<2x32xf32>
    %309 = vector.extract_strided_slice %304 {offsets = [0, 96], sizes = [2, 32], strides = [1, 1]} : vector<2x128xf32> to vector<2x32xf32>
    %310 = arith.mulf %307, %272 : vector<2x32xf32>
    %311 = arith.mulf %306, %308 : vector<2x32xf32>
    %312 = arith.addf %310, %311 : vector<2x32xf32>
    %313 = math.tanh %312 : vector<2x32xf32>
    %314 = arith.mulf %309, %313 : vector<2x32xf32>
    %315 = arith.truncf %293 : vector<2x32xf32> to vector<2x32xbf16>
    %cst_54 = arith.constant dense<0.000000e+00> : vector<2x128xf32>
    %316 = tpu.matmul %315, %1, %cst_54 {dimension_numbers = #tpu.dot_dimension_numbers<[1], [0], [0], [1], [0, 0, 1, 1], [], []>} : vector<2x32xbf16>, vector<32x128xbf16>, vector<2x128xf32> -> vector<2x128xf32>
    %317 = arith.truncf %314 : vector<2x32xf32> to vector<2x32xbf16>
    %cst_55 = arith.constant dense<0.000000e+00> : vector<2x128xf32>
    %318 = tpu.matmul %317, %3, %cst_55 {dimension_numbers = #tpu.dot_dimension_numbers<[1], [0], [0], [1], [0, 0, 1, 1], [], []>} : vector<2x32xbf16>, vector<32x128xbf16>, vector<2x128xf32> -> vector<2x128xf32>
    %319 = arith.addf %316, %318 : vector<2x128xf32>
    %320 = arith.addf %319, %7 : vector<2x128xf32>
    %321 = arith.negf %320 : vector<2x128xf32>
    %322 = math.exp %321 : vector<2x128xf32>
    %cst_56 = arith.constant 1.000000e+00 : f32
    %323 = vector.broadcast %cst_56 : f32 to vector<2x128xf32>
    %324 = arith.addf %323, %322 : vector<2x128xf32>
    %325 = arith.divf %323, %324 : vector<2x128xf32>
    %326 = math.tanh %320 : vector<2x128xf32>
    %327 = vector.extract_strided_slice %325 {offsets = [0, 0], sizes = [2, 32], strides = [1, 1]} : vector<2x128xf32> to vector<2x32xf32>
    %328 = vector.extract_strided_slice %325 {offsets = [0, 32], sizes = [2, 32], strides = [1, 1]} : vector<2x128xf32> to vector<2x32xf32>
    %329 = vector.extract_strided_slice %326 {offsets = [0, 64], sizes = [2, 32], strides = [1, 1]} : vector<2x128xf32> to vector<2x32xf32>
    %330 = vector.extract_strided_slice %325 {offsets = [0, 96], sizes = [2, 32], strides = [1, 1]} : vector<2x128xf32> to vector<2x32xf32>
    %331 = arith.mulf %328, %312 : vector<2x32xf32>
    %332 = arith.mulf %327, %329 : vector<2x32xf32>
    %333 = arith.addf %331, %332 : vector<2x32xf32>
    %334 = math.tanh %333 : vector<2x32xf32>
    %335 = arith.mulf %330, %334 : vector<2x32xf32>
    %336 = arith.truncf %335 : vector<2x32xf32> to vector<2x32xbf16>
    %c0_57 = arith.constant 0 : index
    %c0_58 = arith.constant 0 : index
    %337 = vector.load %arg7[%c0_57, %c0_58] : memref<32x128xbf16, #tpu.memory_space<vmem>>, vector<32x128xbf16>
    %cst_59 = arith.constant dense<0.000000e+00> : vector<2x128xf32>
    %338 = tpu.matmul %336, %337, %cst_59 {dimension_numbers = #tpu.dot_dimension_numbers<[1], [0], [0], [1], [0, 0, 1, 1], [], []>} : vector<2x32xbf16>, vector<32x128xbf16>, vector<2x128xf32> -> vector<2x128xf32>
    %c0_60 = arith.constant 0 : index
    %c0_61 = arith.constant 0 : index
    %339 = vector.load %arg8[%c0_60, %c0_61] : memref<1x128xf32, #tpu.memory_space<vmem>>, vector<1x128xf32>
    %340 = vector.broadcast %339 : vector<1x128xf32> to vector<2x128xf32>
    %341 = arith.addf %338, %340 : vector<2x128xf32>
    %c0_62 = arith.constant 0 : index
    %c0_63 = arith.constant 0 : index
    %342 = vector.load %arg9[%c0_62, %c0_63] : memref<2x128xf32, #tpu.memory_space<vmem>>, vector<2x128xf32>
    tpu.vector_store %arg9[%c0_62, %c0_63], %341 {strides = array<i32>} : memref<2x128xf32, #tpu.memory_space<vmem>>, vector<2x128xf32>,
    return
  }
}

</mosaic_0001>

<bundles_post_ra>
// kernel: tpu_custom_call.1
= control target key start
LH: loop header
LB: loop body
LE: loop exit
PB: predicated region body
PF: predicated region fallthrough
CT: control target
= control target key end

     0   :  { %14 = vsyncpa [#allocation3], 0  ;;  %s2829_s0 = inlined_call_operand.vmem [shape: bf16[16,4], index: 0, kind: input, shape index: {}]   ;;  %s2830_s1 = inlined_call_operand.hbm [shape: bf16[4,128], index: 1, kind: input, shape index: {}]   ;;  %s2831_s2 = inlined_call_operand.hbm [shape: bf16[32,128], index: 2, kind: input, shape index: {}]   ;;  %s2832_s3 = inlined_call_operand.vmem [shape: f32[1,128], index: 3, kind: input, shape index: {}]   ;;  %s2833_s4 = inlined_call_operand.vmem [shape: bf16[32,128], index: 4, kind: input, shape index: {}]   ;;  %s2834_s5 = inlined_call_operand.hbm [shape: bf16[32,128], index: 5, kind: input, shape index: {}]   ;;  %s2835_s6 = inlined_call_operand.vmem [shape: f32[1,128], index: 6, kind: input, shape index: {}]   ;;  %s2836_s7 = inlined_call_operand.hbm [shape: bf16[32,128], index: 7, kind: input, shape index: {}]   ;;  %s2837_s8 = inlined_call_operand.vmem [shape: f32[1,128], index: 8, kind: input, shape index: {}]   ;;  %s2838_s9 = inlined_call_operand.hbm [shape: f32[2,128], index: 9, kind: output, shape index: {}]  }
   0x1   :  { %15 = vsyncpa [#allocation6], 0 }
   0x2   :  { %16 = vsyncpa [#allocation9], 0 }
   0x3   :  { %17 = vsyncpa [#allocation4], 0  ;;  %s2402_s30 = smov [#allocation5]  }
   0x4   :  { %s35_s10 = sshll.u32 %s2402_s30, 4  ;;  %s36_s10 = int_to_ptr.vmem [resolvable:$true] %s35_s10 }
   0x5   :  { %s2302_s11 = scalar_lea.vmem %s36_s10, 256  ;;  %p2307_p1 = scmp.lt.s32.totalorder %s36_s10, %s36_s10 }
   0x6   :  { %p2303_p0 = scmp.ne.s32.totalorder %s36_s10, %s2302_s11  ;;  %p2308_p2 = scmp.lt.s32.totalorder %s2302_s11, %s2302_s11 }
   0x8   :  { %p2309_p3 = por %p2308_p2, %p2307_p1 }
   0xa   :  { %p2310_p4 = pnand %p2309_p3, %p2303_p0 }
   0xc   :  { %2313 = shalt.err (!%p2310_p4)
}
   0xd   :  { %s2403_s12 = smov 64   ;;  %s2404_s13 = smov 4  }
   0xe   :  { %41 = dma.hbm_to_vmem [thread:$0]  %s2831_s2, 256, %s36_s10, [#allocation6], %s2403_s12, %s2403_s12, %s2404_s13  }
   0xf   :  { %s2405_s16 = smov [#allocation2]   ;;  %s2406_s18 = smov [#allocation7]  }
  0x10   :  { %s26_s17 = sshll.u32 %s2405_s16, 4  ;;  %s51_s19 = sshll.u32 %s2406_s18, 4  ;;  %s27_s17 = int_to_ptr.vmem [resolvable:$true] %s26_s17  ;;  %s52_s19 = int_to_ptr.vmem [resolvable:$true] %s51_s19 }
  0x11   :  { %s2322_s20 = scalar_lea.vmem %s27_s17, 32  ;;  %p2327_p6 = scmp.lt.s32.totalorder %s27_s17, %s27_s17 }
  0x12   :  { %p2323_p5 = scmp.ne.s32.totalorder %s27_s17, %s2322_s20  ;;  %p2328_p7 = scmp.lt.s32.totalorder %s2322_s20, %s2322_s20 }
  0x14   :  { %p2329_p8 = por %p2328_p7, %p2327_p6 }
  0x16   :  { %p2330_p9 = pnand %p2329_p8, %p2323_p5 }
  0x18   :  { %2333 = shalt.err (!%p2330_p9)
}
  0x19   :  { %29 = dma.hbm_to_vmem [thread:$0]  %s2830_s1, 32, %s27_s17, [#allocation3]  }
  0x1a   :  { %s2342_s23 = scalar_lea.vmem %s52_s19, 256  ;;  %p2347_p11 = scmp.lt.s32.totalorder %s52_s19, %s52_s19 }
  0x1b   :  { %p2343_p10 = scmp.ne.s32.totalorder %s52_s19, %s2342_s23  ;;  %p2348_p12 = scmp.lt.s32.totalorder %s2342_s23, %s2342_s23 }
  0x1d   :  { %p2349_p13 = por %p2348_p12, %p2347_p11 }
  0x1f   :  { %p2350_p0 = pnand %p2349_p13, %p2343_p10 }
  0x21   :  { %2353 = shalt.err (!%p2350_p0)
}
  0x22   :  { %57 = dma.hbm_to_vmem [thread:$0]  %s2834_s5, 256, %s52_s19, [#allocation6], %s2403_s12, %s2403_s12, %s2404_s13  }
  0x23   :  { %s2407_s25 = smov [#allocation8]  }
  0x24   :  { %s65_s26 = sshll.u32 %s2407_s25, 4  ;;  %s66_s26 = int_to_ptr.vmem [resolvable:$true] %s65_s26 }
  0x25   :  { %s2362_s27 = scalar_lea.vmem %s66_s26, 256  ;;  %p2367_p2 = scmp.lt.s32.totalorder %s66_s26, %s66_s26 }
  0x26   :  { %p2363_p1 = scmp.ne.s32.totalorder %s66_s26, %s2362_s27  ;;  %p2368_p3 = scmp.lt.s32.totalorder %s2362_s27, %s2362_s27 }
  0x28   :  { %p2369_p4 = por %p2368_p3, %p2367_p2 }
  0x2a   :  { %p2370_p5 = pnand %p2369_p4, %p2363_p1 }
  0x2c   :  { %2373 = shalt.err (!%p2370_p5)
}
  0x2d   :  { %71 = dma.hbm_to_vmem [thread:$0]  %s2836_s7, 256, %s66_s26, [#allocation9], %s2403_s12, %s2403_s12, %s2404_s13  }
  0x2e   :  { %2394 = dma.done.wait [#allocation3], 32  }
  0x2f   :  { %2395 = vsyncadd [#allocation3], 4294967264 }
  0x30   :  { %2396 = dma.done.wait [#allocation6], 512  }
  0x31   :  { %2397 = vsyncadd [#allocation6], 4294966784 }
  0x32   :  { %2398 = dma.done.wait [#allocation9], 256  }
  0x33   :  { %2399 = vsyncadd [#allocation9], 4294967040  ;;  %v2408_v0 = vmov 0.0   ;;  %vm2409_vm0 = vmmov 0   ;;  %vm125_vm1 = vcmask 1041408   ;;  %v2490_v3 = vld [vmem:[#allocation5 + $0x8] sm:$0xff]  }
  0x34   :  { %1937 = vmatprep.subr.bf16.mxu0 %v2408_v0  ;;  %1943 = vmatprep.subr.bf16.mxu1 %v2408_v0  ;;  %v87_v1 = vld [vmem:[#allocation2] sm:$0x3]  ;;  %vm121_vm2 = vcmask 31744   ;;  %v2496_v5 = vld [vmem:[#allocation5] sm:$0xff]   ;;  %v2410_v6 = vmov 0   ;;  %v2528_v31 = vld [vmem:[#allocation7] sm:$0xff]  }
  0x35   :  { %1939 = vmatprep.mubr.msk.bf16.mxu0 %vm2409_vm0, %v2408_v0  ;;  %1947 = vmatprep.mubr.msk.bf16.mxu1 %vm2409_vm0, %v2408_v0  ;;  %v127_v2 = vsel %vm125_vm1, %v87_v1, 0  ;;  %v2155_v4 = vld [vmem:[%s2829_s0] sm:$0xff]   ;;  %vm182_vm3 = vcmask 261120   ;;  %v2542_v35 = vld [vmem:[%s2833_s4 + $0x8] sm:$0xff]   ;;  %s2412_s18 = smov [#allocation10]  }
  0x36   :  { %1938 = vmatpush3.bf16.msra.mxu0 %v127_v2  ;;  %1944 = vmatpush3.bf16.msra.mxu1 %v2490_v3  ;;  %v1809_v7 = vld [vmem:[%s2832_s3] ss:$0 sm:$0xff]  ;;  %s2411_s3 = smov 32   ;;  %s1797_s19 = sshll.u32 %s2412_s18, 4  ;;  %s1798_s19 = int_to_ptr.vmem [resolvable:$true] %s1797_s19 }
  0x37   :  { %1951 = vmatprep.subr.bf16.mxu0 %v2408_v0  ;;  %1945 = vmatprep.subr.bf16.mxu1 %v2408_v0  ;;  %v2524_v30 = vld [vmem:[#allocation7 + $0x8] sm:$0xff]   ;;  %p2379_p7 = scmp.lt.s32.totalorder %s1798_s19, %s1798_s19 }
  0x38   :  { %v2549_v37 = vld [vmem:[%s2833_s4] sm:$0xff]  }
  0x39   :  { %1940 = vmatmul.mubr.msk.bf16.vlgmr.msra.gmra.mxu0 %vm121_vm2, %v2155_v4  ;;  %v2567_v48 = vld [vmem:[%s2835_s6] ss:$0 sm:$0xff] }
  0x3a   :  { %1952 = vmatpush3.bf16.msra.mxu0 %v2490_v3  ;;  %1955 = vmatprep.mubr.msk.bf16.mxu0 %vm2409_vm0, %v2408_v0 }
  0x3b   :  { %1946 = vmatpush3.bf16.msra.mxu1 %v2496_v5  ;;  %1953 = vmatprep.subr.bf16.mxu0 %v2408_v0 }
  0x3c   :  { %1959 = vmatprep.subr.bf16.mxu1 %v2408_v0 }
  0x3e   :  { %1948 = vmatmul.mubr.bf16.vlgmr.msra.gmra.mxu1 %v2410_v6  ;;  %1954 = vmatpush3.bf16.msra.mxu0 %v2496_v5 }
  0x3f   :  { %1967 = vmatprep.subr.bf16.mxu0 %v2408_v0  ;;  %1963 = vmatprep.mubr.msk.bf16.mxu1 %vm2409_vm0, %v2408_v0 }
  0x40   :  { %1960 = vmatpush3.bf16.msra.mxu1 %v2524_v30 }
  0x41   :  { %1961 = vmatprep.subr.bf16.mxu1 %v2408_v0 }
  0x44   :  { %1962 = vmatpush3.bf16.msra.mxu1 %v2528_v31 }
  0x45   :  { %1975 = vmatprep.subr.bf16.mxu1 %v2408_v0 }
  0x47   :  { %1964 = vmatmul.mubr.bf16.vlgmr.msra.gmra.mxu1 %v2410_v6 }
  0x48   :  { %1976 = vmatpush3.bf16.msra.mxu1 %v2490_v3  ;;  %1979 = vmatprep.mubr.msk.bf16.mxu1 %vm2409_vm0, %v2408_v0 }
  0x49   :  { %1977 = vmatprep.subr.bf16.mxu1 %v2408_v0 }
  0x4c   :  { %1978 = vmatpush3.bf16.msra.mxu1 %v2496_v5 }
  0x4d   :  { %1991 = vmatprep.subr.bf16.mxu1 %v2408_v0 }
  0xf9   :  { %v163_v8 = vpop.f32.mrf.mxu0 }
  0xfa   :  { %v2513_v9 = vadd.f32 %v1809_v7, %v163_v8 }
  0xfb   :  { %v1941_v10 = vpop.f32.mrf.mxu0 }
  0xfd   :  { %v166_v11 = vpop.f32.mrf.mxu0 }
  0xfe   :  { %v2515_v12 = vadd.f32 %v1809_v7, %v166_v11  ;;  %v220_v13 = vpop.f32.mrf.mxu1 }
  0xff   :  { %v226_v14 = vadd.f32 %v220_v13, %v2513_v9  ;;  %v1942_v15 = vpop.f32.mrf.mxu0 }
 0x100   :  { %v1949_v16 = vpop.f32.mrf.mxu1 }
 0x101   :  { %2163 = vtanh.f32 %v226_v14  ;;  %v1814_v20 = vmul.f32 -1.442695, %v226_v14 }
 0x102   :  { %v223_v17 = vpop.f32.mrf.mxu1 }
 0x103   :  { %2165 = vpow2.f32 %v1814_v20 }
 0x104   :  { %v1950_v18 = vpop.f32.mrf.mxu1 }
 0x107   :  { %v375_v38 = vpop.f32.mrf.mxu1 }
 0x109   :  { %v1965_v39 = vpop.f32.mrf.mxu1 }
 0x10b   :  { %v378_v40 = vpop.f32.mrf.mxu1 }
 0x10d   :  { %v1966_v41 = vpop.f32.mrf.mxu1 }
 0x10e   :  { %v2164_v19 = vpop.eup %2163 }
 0x10f   :  { %236 = vrot.lane.b32.xlu0 %v2164_v19, %s2403_s12 }
 0x110   :  { %v2166_v21 = vpop.eup %2165 }
 0x111   :  { %v230_v22 = vadd.f32 1.0, %v2166_v21 }
 0x113   :  { %2167 = vrcp.f32 %v230_v22 }
 0x120   :  { %v2168_v23 = vpop.eup %2167 }
 0x121   :  { %v234_v26 = vmul.f32 0.0, %v2168_v23 }
 0x181   :  { %v237_v24 = vpop.permute.xlu0 %236 }
 0x182   :  { %v239_v25 = vmul.f32 %v2168_v23, %v237_v24 }
 0x184   :  { %241 = vrot.lane.b32.xlu0 %v239_v25, %s2411_s3 }
 0x1f6   :  { %v242_v27 = vpop.permute.xlu0 %241 }
 0x1f7   :  { %v2520_v28 = vadd.f32 %v242_v27, %v234_v26 }
 0x1f9   :  { %2169 = vtanh.f32 %v2520_v28  ;;  %v310_v8 = vrot.slane %v2520_v28, 6 }
 0x206   :  { %v2170_v29 = vpop.eup %2169 }
 0x207   :  { %247 = vrot.lane.b32.xlu1 %v2170_v29, %s2403_s12 }
 0x279   :  { %v248_v32 = vpop.permute.xlu1 %247 }
 0x27a   :  { %v250_v33 = vmul.f32 %v2168_v23, %v248_v32 }
 0x27c   :  { %v251_v34 = vpack.c.bf16 %v250_v33, %v250_v33 }
 0x27e   :  { %253 = vrot.lane.b32.xlu1 %v251_v34, %s2411_s3 }
 0x2f0   :  { %v254_v36 = vpop.permute.xlu1 %253 }
 0x2f1   :  { %1956 = vmatmul.mubr.msk.bf16.vlgmr.msra.gmra.mxu0 %vm182_vm3, %v254_v36 }
 0x2f2   :  { %1968 = vmatpush3.bf16.msra.mxu0 %v2542_v35  ;;  %1971 = vmatprep.mubr.msk.bf16.mxu0 %vm2409_vm0, %v2408_v0 }
 0x2f3   :  { %1969 = vmatprep.subr.bf16.mxu0 %v2408_v0 }
 0x2f6   :  { %1970 = vmatpush3.bf16.msra.mxu0 %v2549_v37 }
 0x2f7   :  { %1983 = vmatprep.subr.bf16.mxu0 %v2408_v0 }
 0x2f9   :  { %1972 = vmatmul.mubr.msk.bf16.vlgmr.msra.gmra.mxu0 %vm182_vm3, %v254_v36 }
 0x2fa   :  { %1984 = vmatpush3.bf16.msra.mxu0 %v2524_v30  ;;  %1987 = vmatprep.mubr.msk.bf16.mxu0 %vm2409_vm0, %v2408_v0 }
 0x2fb   :  { %1985 = vmatprep.subr.bf16.mxu0 %v2408_v0 }
 0x2fe   :  { %1986 = vmatpush3.bf16.msra.mxu0 %v2528_v31 }
 0x2ff   :  { %1999 = vmatprep.subr.bf16.mxu0 %v2408_v0 }
 0x3b1   :  { %v292_v42 = vpop.f32.mrf.mxu0 }
 0x3b2   :  { %v299_v43 = vrot.slane %v292_v42, 6 }
 0x3b3   :  { %v1957_v44 = vpop.f32.mrf.mxu0 }
 0x3b4   :  { %v301_v45 = vadd.f32 %v299_v43, %v2513_v9 }
 0x3b5   :  { %v295_v46 = vpop.f32.mrf.mxu0 }
 0x3b6   :  { %2171 = vtanh.f32 %v301_v45  ;;  %v1816_v57 = vmul.f32 -1.442695, %v301_v45 }
 0x3b7   :  { %v1958_v47 = vpop.f32.mrf.mxu0 }
 0x3b9   :  { %v427_v49 = vpop.f32.mrf.mxu0 }
 0x3ba   :  { %v428_v50 = vadd.f32 %v427_v49, %v375_v38 }
 0x3bb   :  { %v1973_v51 = vpop.f32.mrf.mxu0 }
 0x3bc   :  { %v433_v52 = vadd.f32 %v2567_v48, %v428_v50 }
 0x3bd   :  { %v430_v53 = vpop.f32.mrf.mxu0 }
 0x3be   :  { %2173 = vtanh.f32 %v433_v52  ;;  %v1822_v58 = vmul.f32 -1.442695, %v433_v52 }
 0x3bf   :  { %v1974_v54 = vpop.f32.mrf.mxu0  ;;  %2175 = vpow2.f32 %v1816_v57 }
 0x3c0   :  { %2177 = vpow2.f32 %v1822_v58 }
 0x3c3   :  { %v2172_v55 = vpop.eup %2171 }
 0x3c4   :  { %314 = vrot.lane.b32.xlu0 %v2172_v55, %s2403_s12 }
 0x3cb   :  { %v2174_v56 = vpop.eup %2173 }
 0x3cc   :  { %443 = vrot.lane.b32.xlu1 %v2174_v56, %s2403_s12  ;;  %v2176_v59 = vpop.eup %2175 }
 0x3cd   :  { %v305_v60 = vadd.f32 1.0, %v2176_v59  ;;  %v2178_v61 = vpop.eup %2177 }
 0x3ce   :  { %v437_v62 = vadd.f32 1.0, %v2178_v61 }
 0x3cf   :  { %2179 = vrcp.f32 %v305_v60 }
 0x3d0   :  { %2181 = vrcp.f32 %v437_v62 }
 0x3dc   :  { %v2180_v63 = vpop.eup %2179 }
 0x3dd   :  { %v2182_v4 = vpop.eup %2181  ;;  %v312_v10 = vmul.f32 %v2180_v63, %v310_v8 }
 0x3de   :  { %v441_v14 = vmul.f32 0.0, %v2182_v4 }
 0x436   :  { %v315_v1 = vpop.permute.xlu0 %314 }
 0x437   :  { %v317_v2 = vmul.f32 %v2180_v63, %v315_v1 }
 0x439   :  { %319 = vrot.lane.b32.xlu0 %v317_v2, %s2411_s3 }
 0x43e   :  { %v444_v6 = vpop.permute.xlu1 %443 }
 0x43f   :  { %v446_v7 = vmul.f32 %v2182_v4, %v444_v6 }
 0x441   :  { %448 = vrot.lane.b32.xlu1 %v446_v7, %s2411_s3 }
 0x4ab   :  { %v320_v11 = vpop.permute.xlu0 %319 }
 0x4ac   :  { %v2575_v13 = vadd.f32 %v320_v11, %v312_v10 }
 0x4ae   :  { %2183 = vtanh.f32 %v2575_v13 }
 0x4b3   :  { %v449_v15 = vpop.permute.xlu1 %448 }
 0x4b4   :  { %v2578_v16 = vadd.f32 %v449_v15, %v441_v14 }
 0x4b6   :  { %2185 = vtanh.f32 %v2578_v16 }
 0x4bb   :  { %v2184_v17 = vpop.eup %2183 }
 0x4bc   :  { %325 = vrot.lane.b32.xlu0 %v2184_v17, %s2403_s12 }
 0x4c3   :  { %v2186_v18 = vpop.eup %2185 }
 0x4c4   :  { %454 = vrot.lane.b32.xlu1 %v2186_v18, %s2403_s12 }
 0x52e   :  { %v326_v19 = vpop.permute.xlu0 %325 }
 0x52f   :  { %v328_v20 = vmul.f32 %v2180_v63, %v326_v19  ;;  %v518_v63 = vrot.slane %v2575_v13, 6 }
 0x531   :  { %v458_v21 = vpack.c.bf16 %v328_v20, %v328_v20 }
 0x533   :  { %v460_v22 = vrot.slane %v458_v21, 1 }
 0x535   :  { %461 = vrot.lane.b32.xlu0 %v460_v22, %s2411_s3 }
 0x536   :  { %v455_v23 = vpop.permute.xlu1 %454 }
 0x537   :  { %v457_v24 = vmul.f32 %v2182_v4, %v455_v23 }
 0x539   :  { %v537_v25 = vpack.c.bf16 %v457_v24, %v457_v24 }
 0x53b   :  { %539 = vrot.lane.b32.xlu1 %v537_v25, %s2411_s3 }
 0x5a7   :  { %v462_v26 = vpop.permute.xlu0 %461 }
 0x5a8   :  { %1980 = vmatmul.mubr.msk.bf16.vlgmr.msra.gmra.mxu1 %vm182_vm3, %v462_v26 }
 0x5a9   :  { %1992 = vmatpush3.bf16.msra.mxu1 %v2542_v35  ;;  %1995 = vmatprep.mubr.msk.bf16.mxu1 %vm2409_vm0, %v2408_v0 }
 0x5aa   :  { %1993 = vmatprep.subr.bf16.mxu1 %v2408_v0 }
 0x5ad   :  { %1994 = vmatpush3.bf16.msra.mxu1 %v2549_v37  ;;  %v540_v27 = vpop.permute.xlu1 %539 }
 0x5ae   :  { %1988 = vmatmul.mubr.msk.bf16.vlgmr.msra.gmra.mxu0 %vm182_vm3, %v540_v27  ;;  %2007 = vmatprep.subr.bf16.mxu1 %v2408_v0 }
 0x5af   :  { %2000 = vmatpush3.bf16.msra.mxu0 %v2490_v3  ;;  %2003 = vmatprep.mubr.msk.bf16.mxu0 %vm2409_vm0, %v2408_v0 }
 0x5b0   :  { %1996 = vmatmul.mubr.msk.bf16.vlgmr.msra.gmra.mxu1 %vm182_vm3, %v462_v26  ;;  %2001 = vmatprep.subr.bf16.mxu0 %v2408_v0 }
 0x5b1   :  { %2008 = vmatpush3.bf16.msra.mxu1 %v2524_v30  ;;  %2011 = vmatprep.mubr.msk.bf16.mxu1 %vm2409_vm0, %v2408_v0 }
 0x5b2   :  { %2009 = vmatprep.subr.bf16.mxu1 %v2408_v0 }
 0x5b3   :  { %2002 = vmatpush3.bf16.msra.mxu0 %v2496_v5 }
 0x5b4   :  { %2015 = vmatprep.subr.bf16.mxu0 %v2408_v0 }
 0x5b5   :  { %2010 = vmatpush3.bf16.msra.mxu1 %v2528_v31 }
 0x5b6   :  { %2023 = vmatprep.subr.bf16.mxu1 %v2408_v0 }
 0x668   :  { %v500_v28 = vpop.f32.mrf.mxu1 }
 0x669   :  { %v507_v29 = vrot.slane %v500_v28, 4 }
 0x66a   :  { %v1981_v32 = vpop.f32.mrf.mxu1 }
 0x66b   :  { %v509_v33 = vadd.f32 %v507_v29, %v2513_v9 }
 0x66c   :  { %v503_v34 = vpop.f32.mrf.mxu1 }
 0x66d   :  { %2187 = vtanh.f32 %v509_v33  ;;  %v1824_v51 = vmul.f32 -1.442695, %v509_v33 }
 0x66e   :  { %v1982_v36 = vpop.f32.mrf.mxu1  ;;  %v578_v38 = vpop.f32.mrf.mxu0 }
 0x670   :  { %v1989_v39 = vpop.f32.mrf.mxu0  ;;  %v618_v40 = vpop.f32.mrf.mxu1 }
 0x671   :  { %v619_v41 = vadd.f32 %v618_v40, %v578_v38 }
 0x672   :  { %v581_v42 = vpop.f32.mrf.mxu0  ;;  %v1997_v43 = vpop.f32.mrf.mxu1 }
 0x673   :  { %v624_v44 = vadd.f32 %v2567_v48, %v619_v41 }
 0x674   :  { %v1990_v45 = vpop.f32.mrf.mxu0  ;;  %v621_v46 = vpop.f32.mrf.mxu1 }
 0x675   :  { %2189 = vtanh.f32 %v624_v44  ;;  %v1827_v52 = vmul.f32 -1.442695, %v624_v44 }
 0x676   :  { %v1998_v47 = vpop.f32.mrf.mxu1  ;;  %2191 = vpow2.f32 %v1824_v51 }
 0x677   :  { %2193 = vpow2.f32 %v1827_v52 }
 0x67a   :  { %v2188_v49 = vpop.eup %2187 }
 0x67b   :  { %522 = vrot.lane.b32.xlu0 %v2188_v49, %s2403_s12 }
 0x682   :  { %v2190_v50 = vpop.eup %2189 }
 0x683   :  { %634 = vrot.lane.b32.xlu1 %v2190_v50, %s2403_s12  ;;  %v2192_v53 = vpop.eup %2191 }
 0x684   :  { %v513_v54 = vadd.f32 1.0, %v2192_v53  ;;  %v2194_v55 = vpop.eup %2193 }
 0x685   :  { %v628_v56 = vadd.f32 1.0, %v2194_v55 }
 0x686   :  { %2195 = vrcp.f32 %v513_v54 }
 0x687   :  { %2197 = vrcp.f32 %v628_v56 }
 0x693   :  { %v2196_v57 = vpop.eup %2195 }
 0x694   :  { %v2198_v60 = vpop.eup %2197  ;;  %v520_v1 = vmul.f32 %v2196_v57, %v518_v63 }
 0x695   :  { %v632_v6 = vmul.f32 %v2198_v60, %v2578_v16 }
 0x6ed   :  { %v523_v58 = vpop.permute.xlu0 %522 }
 0x6ee   :  { %v525_v59 = vmul.f32 %v2196_v57, %v523_v58 }
 0x6f0   :  { %527 = vrot.lane.b32.xlu0 %v525_v59, %s2411_s3 }
 0x6f5   :  { %v635_v61 = vpop.permute.xlu1 %634 }
 0x6f6   :  { %v637_v62 = vmul.f32 %v2198_v60, %v635_v61 }
 0x6f8   :  { %639 = vrot.lane.b32.xlu1 %v637_v62, %s2411_s3 }
 0x762   :  { %v528_v2 = vpop.permute.xlu0 %527 }
 0x763   :  { %v2613_v4 = vadd.f32 %v528_v2, %v520_v1 }
 0x765   :  { %2199 = vtanh.f32 %v2613_v4  ;;  %v709_v56 = vrot.slane %v2613_v4, 6 }
 0x76a   :  { %v640_v7 = vpop.permute.xlu1 %639 }
 0x76b   :  { %v2617_v8 = vadd.f32 %v640_v7, %v632_v6 }
 0x76d   :  { %2201 = vtanh.f32 %v2617_v8 }
 0x772   :  { %v2200_v10 = vpop.eup %2199 }
 0x773   :  { %533 = vrot.lane.b32.xlu0 %v2200_v10, %s2403_s12 }
 0x77a   :  { %v2202_v11 = vpop.eup %2201 }
 0x77b   :  { %645 = vrot.lane.b32.xlu1 %v2202_v11, %s2403_s12 }
 0x7e5   :  { %v534_v13 = vpop.permute.xlu0 %533 }
 0x7e6   :  { %v536_v14 = vmul.f32 %v2196_v57, %v534_v13 }
 0x7e8   :  { %v649_v15 = vpack.c.bf16 %v536_v14, %v536_v14 }
 0x7ea   :  { %v651_v17 = vrot.slane %v649_v15, 2 }
 0x7ec   :  { %652 = vrot.lane.b32.xlu0 %v651_v17, %s2411_s3 }
 0x7ed   :  { %v646_v18 = vpop.permute.xlu1 %645 }
 0x7ee   :  { %v648_v19 = vmul.f32 %v2198_v60, %v646_v18 }
 0x7f0   :  { %v728_v16 = vpack.c.bf16 %v648_v19, %v648_v19 }
 0x7f2   :  { %730 = vrot.lane.b32.xlu1 %v728_v16, %s2411_s3 }
 0x85e   :  { %v653_v20 = vpop.permute.xlu0 %652 }
 0x85f   :  { %2004 = vmatmul.mubr.msk.bf16.vlgmr.msra.gmra.mxu0 %vm182_vm3, %v653_v20 }
 0x860   :  { %2016 = vmatpush3.bf16.msra.mxu0 %v2542_v35  ;;  %2019 = vmatprep.mubr.msk.bf16.mxu0 %vm2409_vm0, %v2408_v0 }
 0x861   :  { %2017 = vmatprep.subr.bf16.mxu0 %v2408_v0 }
 0x864   :  { %2018 = vmatpush3.bf16.msra.mxu0 %v2549_v37  ;;  %v731_v21 = vpop.permute.xlu1 %730 }
 0x865   :  { %2012 = vmatmul.mubr.msk.bf16.vlgmr.msra.gmra.mxu1 %vm182_vm3, %v731_v21  ;;  %2031 = vmatprep.subr.bf16.mxu0 %v2408_v0 }
 0x866   :  { %2024 = vmatpush3.bf16.msra.mxu1 %v2490_v3  ;;  %2027 = vmatprep.mubr.msk.bf16.mxu1 %vm2409_vm0, %v2408_v0 }
 0x867   :  { %2020 = vmatmul.mubr.msk.bf16.vlgmr.msra.gmra.mxu0 %vm182_vm3, %v653_v20  ;;  %2025 = vmatprep.subr.bf16.mxu1 %v2408_v0 }
 0x868   :  { %2032 = vmatpush3.bf16.msra.mxu0 %v2524_v30  ;;  %2035 = vmatprep.mubr.msk.bf16.mxu0 %vm2409_vm0, %v2408_v0 }
 0x869   :  { %2033 = vmatprep.subr.bf16.mxu0 %v2408_v0 }
 0x86a   :  { %2026 = vmatpush3.bf16.msra.mxu1 %v2496_v5 }
 0x86b   :  { %2039 = vmatprep.subr.bf16.mxu1 %v2408_v0 }
 0x86c   :  { %2034 = vmatpush3.bf16.msra.mxu0 %v2528_v31 }
 0x86d   :  { %2047 = vmatprep.subr.bf16.mxu0 %v2408_v0 }
 0x91f   :  { %v691_v22 = vpop.f32.mrf.mxu0 }
 0x920   :  { %v698_v23 = vrot.slane %v691_v22, 2 }
 0x921   :  { %v2005_v24 = vpop.f32.mrf.mxu0 }
 0x922   :  { %v700_v25 = vadd.f32 %v698_v23, %v2513_v9 }
 0x923   :  { %v694_v26 = vpop.f32.mrf.mxu0 }
 0x924   :  { %2203 = vtanh.f32 %v700_v25  ;;  %v1829_v9 = vmul.f32 -1.442695, %v700_v25 }
 0x925   :  { %v2006_v27 = vpop.f32.mrf.mxu0  ;;  %v769_v28 = vpop.f32.mrf.mxu1 }
 0x927   :  { %v2013_v29 = vpop.f32.mrf.mxu1  ;;  %v809_v32 = vpop.f32.mrf.mxu0 }
 0x928   :  { %v810_v33 = vadd.f32 %v809_v32, %v769_v28 }
 0x929   :  { %v772_v34 = vpop.f32.mrf.mxu1  ;;  %v2021_v36 = vpop.f32.mrf.mxu0 }
 0x92a   :  { %v815_v38 = vadd.f32 %v2567_v48, %v810_v33 }
 0x92b   :  { %v2014_v39 = vpop.f32.mrf.mxu1  ;;  %v812_v40 = vpop.f32.mrf.mxu0 }
 0x92c   :  { %2205 = vtanh.f32 %v815_v38  ;;  %v1832_v44 = vmul.f32 -1.442695, %v815_v38 }
 0x92d   :  { %v2022_v41 = vpop.f32.mrf.mxu0  ;;  %2207 = vpow2.f32 %v1829_v9 }
 0x92e   :  { %2209 = vpow2.f32 %v1832_v44 }
 0x931   :  { %v2204_v42 = vpop.eup %2203 }
 0x932   :  { %713 = vrot.lane.b32.xlu0 %v2204_v42, %s2403_s12 }
 0x939   :  { %v2206_v43 = vpop.eup %2205 }
 0x93a   :  { %825 = vrot.lane.b32.xlu1 %v2206_v43, %s2403_s12  ;;  %v2208_v45 = vpop.eup %2207 }
 0x93b   :  { %v704_v46 = vadd.f32 1.0, %v2208_v45  ;;  %v2210_v47 = vpop.eup %2209 }
 0x93c   :  { %v819_v49 = vadd.f32 1.0, %v2210_v47 }
 0x93d   :  { %2211 = vrcp.f32 %v704_v46 }
 0x93e   :  { %2213 = vrcp.f32 %v819_v49 }
 0x94a   :  { %v2212_v50 = vpop.eup %2211 }
 0x94b   :  { %v2214_v53 = vpop.eup %2213  ;;  %v711_v57 = vmul.f32 %v2212_v50, %v709_v56 }
 0x94c   :  { %v823_v60 = vmul.f32 %v2214_v53, %v2617_v8 }
 0x9a4   :  { %v714_v51 = vpop.permute.xlu0 %713 }
 0x9a5   :  { %v716_v52 = vmul.f32 %v2212_v50, %v714_v51 }
 0x9a7   :  { %718 = vrot.lane.b32.xlu0 %v716_v52, %s2411_s3 }
 0x9ac   :  { %v826_v54 = vpop.permute.xlu1 %825 }
 0x9ad   :  { %v828_v55 = vmul.f32 %v2214_v53, %v826_v54 }
 0x9af   :  { %830 = vrot.lane.b32.xlu1 %v828_v55, %s2411_s3 }
 0xa19   :  { %v719_v58 = vpop.permute.xlu0 %718 }
 0xa1a   :  { %v2652_v59 = vadd.f32 %v719_v58, %v711_v57 }
 0xa1c   :  { %2215 = vtanh.f32 %v2652_v59  ;;  %v897_v47 = vrot.slane %v2652_v59, 6 }
 0xa21   :  { %v831_v61 = vpop.permute.xlu1 %830 }
 0xa22   :  { %v2656_v62 = vadd.f32 %v831_v61, %v823_v60 }
 0xa24   :  { %2217 = vtanh.f32 %v2656_v62 }
 0xa29   :  { %v2216_v63 = vpop.eup %2215 }
 0xa2a   :  { %724 = vrot.lane.b32.xlu0 %v2216_v63, %s2403_s12 }
 0xa31   :  { %v2218_v1 = vpop.eup %2217 }
 0xa32   :  { %836 = vrot.lane.b32.xlu1 %v2218_v1, %s2403_s12 }
 0xa9c   :  { %v725_v2 = vpop.permute.xlu0 %724 }
 0xa9d   :  { %v727_v4 = vmul.f32 %v2212_v50, %v725_v2 }
 0xa9f   :  { %v840_v6 = vpack.c.bf16 %v727_v4, %v727_v4 }
 0xaa1   :  { %v842_v7 = vrot.slane %v840_v6, 3 }
 0xaa3   :  { %843 = vrot.lane.b32.xlu0 %v842_v7, %s2411_s3 }
 0xaa4   :  { %v837_v10 = vpop.permute.xlu1 %836 }
 0xaa5   :  { %v839_v11 = vmul.f32 %v2214_v53, %v837_v10 }
 0xaa7   :  { %v916_v8 = vpack.c.bf16 %v839_v11, %v839_v11 }
 0xaa9   :  { %918 = vrot.lane.b32.xlu1 %v916_v8, %s2411_s3 }
 0xb15   :  { %v844_v13 = vpop.permute.xlu0 %843 }
 0xb16   :  { %2028 = vmatmul.mubr.msk.bf16.vlgmr.msra.gmra.mxu1 %vm182_vm3, %v844_v13 }
 0xb17   :  { %2040 = vmatpush3.bf16.msra.mxu1 %v2542_v35  ;;  %2043 = vmatprep.mubr.msk.bf16.mxu1 %vm2409_vm0, %v2408_v0 }
 0xb18   :  { %2041 = vmatprep.subr.bf16.mxu1 %v2408_v0 }
 0xb1b   :  { %2042 = vmatpush3.bf16.msra.mxu1 %v2549_v37  ;;  %v919_v14 = vpop.permute.xlu1 %918 }
 0xb1c   :  { %2036 = vmatmul.mubr.msk.bf16.vlgmr.msra.gmra.mxu0 %vm182_vm3, %v919_v14  ;;  %2055 = vmatprep.subr.bf16.mxu1 %v2408_v0 }
 0xb1d   :  { %2048 = vmatpush3.bf16.msra.mxu0 %v2490_v3  ;;  %2051 = vmatprep.mubr.msk.bf16.mxu0 %vm2409_vm0, %v2408_v0 }
 0xb1e   :  { %2044 = vmatmul.mubr.msk.bf16.vlgmr.msra.gmra.mxu1 %vm182_vm3, %v844_v13  ;;  %2049 = vmatprep.subr.bf16.mxu0 %v2408_v0 }
 0xb1f   :  { %2056 = vmatpush3.bf16.msra.mxu1 %v2524_v30  ;;  %2059 = vmatprep.mubr.msk.bf16.mxu1 %vm2409_vm0, %v2408_v0 }
 0xb20   :  { %2057 = vmatprep.subr.bf16.mxu1 %v2408_v0 }
 0xb21   :  { %2050 = vmatpush3.bf16.msra.mxu0 %v2496_v5 }
 0xb22   :  { %2063 = vmatprep.subr.bf16.mxu0 %v2408_v0 }
 0xb23   :  { %2058 = vmatpush3.bf16.msra.mxu1 %v2528_v31 }
 0xb24   :  { %2071 = vmatprep.subr.bf16.mxu1 %v2408_v0 }
 0xbd6   :  { %v882_v15 = vpop.f32.mrf.mxu1 }
 0xbd7   :  { %v888_v17 = vadd.f32 %v882_v15, %v2515_v12 }
 0xbd8   :  { %v2029_v18 = vpop.f32.mrf.mxu1 }
 0xbd9   :  { %2219 = vtanh.f32 %v888_v17  ;;  %v1834_v34 = vmul.f32 -1.442695, %v888_v17 }
 0xbda   :  { %v885_v19 = vpop.f32.mrf.mxu1 }
 0xbdc   :  { %v2030_v16 = vpop.f32.mrf.mxu1  ;;  %v957_v20 = vpop.f32.mrf.mxu0 }
 0xbde   :  { %v2037_v21 = vpop.f32.mrf.mxu0  ;;  %v997_v22 = vpop.f32.mrf.mxu1 }
 0xbdf   :  { %v998_v23 = vadd.f32 %v997_v22, %v957_v20 }
 0xbe0   :  { %v960_v24 = vpop.f32.mrf.mxu0  ;;  %v2045_v25 = vpop.f32.mrf.mxu1 }
 0xbe1   :  { %v1003_v26 = vadd.f32 %v2567_v48, %v998_v23 }
 0xbe2   :  { %v2038_v27 = vpop.f32.mrf.mxu0  ;;  %v1000_v28 = vpop.f32.mrf.mxu1 }
 0xbe3   :  { %2221 = vtanh.f32 %v1003_v26  ;;  %v1837_v36 = vmul.f32 -1.442695, %v1003_v26 }
 0xbe4   :  { %v2046_v29 = vpop.f32.mrf.mxu1  ;;  %2223 = vpow2.f32 %v1834_v34 }
 0xbe5   :  { %2225 = vpow2.f32 %v1837_v36 }
 0xbe6   :  { %v2220_v32 = vpop.eup %2219 }
 0xbe7   :  { %901 = vrot.lane.b32.xlu0 %v2220_v32, %s2403_s12 }
 0xbf0   :  { %v2222_v33 = vpop.eup %2221 }
 0xbf1   :  { %1013 = vrot.lane.b32.xlu1 %v2222_v33, %s2403_s12  ;;  %v2224_v38 = vpop.eup %2223 }
 0xbf2   :  { %v892_v39 = vadd.f32 1.0, %v2224_v38  ;;  %v2226_v40 = vpop.eup %2225 }
 0xbf3   :  { %v1007_v41 = vadd.f32 1.0, %v2226_v40 }
 0xbf4   :  { %2227 = vrcp.f32 %v892_v39 }
 0xbf5   :  { %2229 = vrcp.f32 %v1007_v41 }
 0xc01   :  { %v2228_v42 = vpop.eup %2227 }
 0xc02   :  { %v2230_v44 = vpop.eup %2229  ;;  %v899_v49 = vmul.f32 %v2228_v42, %v897_v47 }
 0xc03   :  { %v1011_v52 = vmul.f32 %v2230_v44, %v2656_v62 }
 0xc59   :  { %v902_v43 = vpop.permute.xlu0 %901 }
 0xc5a   :  { %v904_v9 = vmul.f32 %v2228_v42, %v902_v43 }
 0xc5c   :  { %906 = vrot.lane.b32.xlu0 %v904_v9, %s2411_s3 }
 0xc63   :  { %v1014_v45 = vpop.permute.xlu1 %1013 }
 0xc64   :  { %v1016_v46 = vmul.f32 %v2230_v44, %v1014_v45 }
 0xc66   :  { %1018 = vrot.lane.b32.xlu1 %v1016_v46, %s2411_s3 }
 0xcce   :  { %v907_v50 = vpop.permute.xlu0 %906 }
 0xccf   :  { %v2691_v51 = vadd.f32 %v907_v50, %v899_v49 }
 0xcd1   :  { %2231 = vtanh.f32 %v2691_v51  ;;  %v1087_v40 = vrot.slane %v2691_v51, 6 }
 0xcd8   :  { %v1019_v53 = vpop.permute.xlu1 %1018 }
 0xcd9   :  { %v2695_v54 = vadd.f32 %v1019_v53, %v1011_v52 }
 0xcdb   :  { %2233 = vtanh.f32 %v2695_v54 }
 0xcde   :  { %v2232_v55 = vpop.eup %2231 }
 0xcdf   :  { %912 = vrot.lane.b32.xlu0 %v2232_v55, %s2403_s12 }
 0xce8   :  { %v2234_v56 = vpop.eup %2233 }
 0xce9   :  { %1024 = vrot.lane.b32.xlu1 %v2234_v56, %s2403_s12 }
 0xd51   :  { %v913_v57 = vpop.permute.xlu0 %912 }
 0xd52   :  { %v915_v58 = vmul.f32 %v2228_v42, %v913_v57 }
 0xd54   :  { %v1028_v59 = vpack.c.bf16 %v915_v58, %v915_v58 }
 0xd56   :  { %1030 = vrot.lane.b32.xlu0 %v1028_v59, %s2411_s3 }
 0xd5b   :  { %v1025_v60 = vpop.permute.xlu1 %1024 }
 0xd5c   :  { %v1027_v61 = vmul.f32 %v2230_v44, %v1025_v60 }
 0xd5e   :  { %v1106_v63 = vpack.c.bf16 %v1027_v61, %v1027_v61 }
 0xd60   :  { %1108 = vrot.lane.b32.xlu1 %v1106_v63, %s2411_s3 }
 0xdc8   :  { %v1031_v62 = vpop.permute.xlu0 %1030 }
 0xdc9   :  { %2052 = vmatmul.mubr.msk.bf16.vlgmr.msra.gmra.mxu0 %vm182_vm3, %v1031_v62 }
 0xdca   :  { %2064 = vmatpush3.bf16.msra.mxu0 %v2542_v35  ;;  %2067 = vmatprep.mubr.msk.bf16.mxu0 %vm2409_vm0, %v2408_v0 }
 0xdcb   :  { %2065 = vmatprep.subr.bf16.mxu0 %v2408_v0 }
 0xdce   :  { %2066 = vmatpush3.bf16.msra.mxu0 %v2549_v37 }
 0xdcf   :  { %2079 = vmatprep.subr.bf16.mxu0 %v2408_v0 }
 0xdd1   :  { %2068 = vmatmul.mubr.msk.bf16.vlgmr.msra.gmra.mxu0 %vm182_vm3, %v1031_v62 }
 0xdd2   :  { %v1109_v1 = vpop.permute.xlu1 %1108  ;;  %2080 = vmatpush3.bf16.msra.mxu0 %v2524_v30  ;;  %2083 = vmatprep.mubr.msk.bf16.mxu0 %vm2409_vm0, %v2408_v0 }
 0xdd3   :  { %2060 = vmatmul.mubr.msk.bf16.vlgmr.msra.gmra.mxu1 %vm182_vm3, %v1109_v1  ;;  %2081 = vmatprep.subr.bf16.mxu0 %v2408_v0 }
 0xdd4   :  { %2072 = vmatpush3.bf16.msra.mxu1 %v2490_v3  ;;  %2075 = vmatprep.mubr.msk.bf16.mxu1 %vm2409_vm0, %v2408_v0 }
 0xdd5   :  { %2073 = vmatprep.subr.bf16.mxu1 %v2408_v0 }
 0xdd6   :  { %2082 = vmatpush3.bf16.msra.mxu0 %v2528_v31 }
 0xdd7   :  { %2095 = vmatprep.subr.bf16.mxu0 %v2408_v0 }
 0xdd8   :  { %2074 = vmatpush3.bf16.msra.mxu1 %v2496_v5 }
 0xdd9   :  { %2087 = vmatprep.subr.bf16.mxu1 %v2408_v0 }
 0xe89   :  { %v1069_v2 = vpop.f32.mrf.mxu0 }
 0xe8a   :  { %v1076_v4 = vrot.slane %v1069_v2, 6 }
 0xe8b   :  { %v2053_v6 = vpop.f32.mrf.mxu0 }
 0xe8c   :  { %v1078_v7 = vadd.f32 %v1076_v4, %v2515_v12 }
 0xe8d   :  { %v1072_v10 = vpop.f32.mrf.mxu0 }
 0xe8e   :  { %2235 = vtanh.f32 %v1078_v7  ;;  %v1839_v24 = vmul.f32 -1.442695, %v1078_v7 }
 0xe8f   :  { %v2054_v11 = vpop.f32.mrf.mxu0 }
 0xe91   :  { %v1187_v8 = vpop.f32.mrf.mxu0 }
 0xe93   :  { %v1147_v13 = vpop.f32.mrf.mxu1  ;;  %v2069_v14 = vpop.f32.mrf.mxu0 }
 0xe94   :  { %v1188_v15 = vadd.f32 %v1187_v8, %v1147_v13 }
 0xe95   :  { %v2061_v17 = vpop.f32.mrf.mxu1  ;;  %v1190_v18 = vpop.f32.mrf.mxu0 }
 0xe96   :  { %v1193_v19 = vadd.f32 %v2567_v48, %v1188_v15 }
 0xe97   :  { %v1150_v16 = vpop.f32.mrf.mxu1  ;;  %v2070_v20 = vpop.f32.mrf.mxu0 }
 0xe98   :  { %2237 = vtanh.f32 %v1193_v19  ;;  %v1842_v25 = vmul.f32 -1.442695, %v1193_v19 }
 0xe99   :  { %v2062_v21 = vpop.f32.mrf.mxu1  ;;  %2239 = vpow2.f32 %v1839_v24 }
 0xe9a   :  { %2241 = vpow2.f32 %v1842_v25 }
 0xe9b   :  { %v2236_v22 = vpop.eup %2235 }
 0xe9c   :  { %1091 = vrot.lane.b32.xlu0 %v2236_v22, %s2403_s12 }
 0xea5   :  { %v2238_v23 = vpop.eup %2237 }
 0xea6   :  { %1203 = vrot.lane.b32.xlu1 %v2238_v23, %s2403_s12  ;;  %v2240_v26 = vpop.eup %2239 }
 0xea7   :  { %v1082_v27 = vadd.f32 1.0, %v2240_v26  ;;  %v2242_v28 = vpop.eup %2241 }
 0xea8   :  { %v1197_v29 = vadd.f32 1.0, %v2242_v28 }
 0xea9   :  { %2243 = vrcp.f32 %v1082_v27 }
 0xeaa   :  { %2245 = vrcp.f32 %v1197_v29 }
 0xeb6   :  { %v2244_v32 = vpop.eup %2243 }
 0xeb7   :  { %v2246_v36 = vpop.eup %2245  ;;  %v1089_v41 = vmul.f32 %v2244_v32, %v1087_v40 }
 0xeb8   :  { %v1201_v9 = vmul.f32 %v2246_v36, %v2695_v54 }
 0xf0e   :  { %v1092_v33 = vpop.permute.xlu0 %1091 }
 0xf0f   :  { %v1094_v34 = vmul.f32 %v2244_v32, %v1092_v33 }
 0xf11   :  { %1096 = vrot.lane.b32.xlu0 %v1094_v34, %s2411_s3 }
 0xf18   :  { %v1204_v38 = vpop.permute.xlu1 %1203 }
 0xf19   :  { %v1206_v39 = vmul.f32 %v2246_v36, %v1204_v38 }
 0xf1b   :  { %1208 = vrot.lane.b32.xlu1 %v1206_v39, %s2411_s3 }
 0xf83   :  { %v1097_v42 = vpop.permute.xlu0 %1096 }
 0xf84   :  { %v2730_v43 = vadd.f32 %v1097_v42, %v1089_v41 }
 0xf86   :  { %2247 = vtanh.f32 %v2730_v43  ;;  %v1278_v25 = vrot.slane %v2730_v43, 6 }
 0xf8d   :  { %v1209_v44 = vpop.permute.xlu1 %1208 }
 0xf8e   :  { %v2734_v45 = vadd.f32 %v1209_v44, %v1201_v9 }
 0xf90   :  { %2249 = vtanh.f32 %v2734_v45 }
 0xf93   :  { %v2248_v46 = vpop.eup %2247 }
 0xf94   :  { %1102 = vrot.lane.b32.xlu0 %v2248_v46, %s2403_s12  ;;  %v2291_v46 = vld [vmem:[#allocation7 + $0x8] sm:$0xff]  }
 0xf9d   :  { %v2250_v47 = vpop.eup %2249 }
 0xf9e   :  { %1214 = vrot.lane.b32.xlu1 %v2250_v47, %s2403_s12  ;;  %v2292_v47 = vld [vmem:[#allocation7] sm:$0xff]  }
0x1006   :  { %v1103_v49 = vpop.permute.xlu0 %1102 }
0x1007   :  { %v1105_v50 = vmul.f32 %v2244_v32, %v1103_v49 }
0x1009   :  { %v1218_v51 = vpack.c.bf16 %v1105_v50, %v1105_v50 }
0x100b   :  { %v1220_v52 = vrot.slane %v1218_v51, 1 }
0x100d   :  { %1221 = vrot.lane.b32.xlu0 %v1220_v52, %s2411_s3 }
0x1010   :  { %v1215_v53 = vpop.permute.xlu1 %1214 }
0x1011   :  { %v1217_v55 = vmul.f32 %v2246_v36, %v1215_v53 }
0x1013   :  { %v1297_v54 = vpack.c.bf16 %v1217_v55, %v1217_v55 }
0x1015   :  { %1299 = vrot.lane.b32.xlu1 %v1297_v54, %s2411_s3 }
0x107f   :  { %v1222_v56 = vpop.permute.xlu0 %1221 }
0x1080   :  { %2076 = vmatmul.mubr.msk.bf16.vlgmr.msra.gmra.mxu1 %vm182_vm3, %v1222_v56 }
0x1081   :  { %2088 = vmatpush3.bf16.msra.mxu1 %v2542_v35  ;;  %2091 = vmatprep.mubr.msk.bf16.mxu1 %vm2409_vm0, %v2408_v0 }
0x1082   :  { %2089 = vmatprep.subr.bf16.mxu1 %v2408_v0 }
0x1085   :  { %2090 = vmatpush3.bf16.msra.mxu1 %v2549_v37 }
0x1086   :  { %2103 = vmatprep.subr.bf16.mxu1 %v2408_v0 }
0x1087   :  { %v1300_v57 = vpop.permute.xlu1 %1299 }
0x1088   :  { %2084 = vmatmul.mubr.msk.bf16.vlgmr.msra.gmra.mxu0 %vm182_vm3, %v1300_v57  ;;  %2092 = vmatmul.mubr.msk.bf16.vlgmr.msra.gmra.mxu1 %vm182_vm3, %v1222_v56 }
0x1089   :  { %2096 = vmatpush3.bf16.msra.mxu0 %v2490_v3  ;;  %2104 = vmatpush3.bf16.msra.mxu1 %v2524_v30 }
0x108a   :  { %2097 = vmatprep.subr.bf16.mxu0 %v2408_v0  ;;  %2099 = vmatprep.mubr.msk.bf16.mxu0 %vm2409_vm0, %v2408_v0 }
0x108b   :  { %2105 = vmatprep.subr.bf16.mxu1 %v2408_v0  ;;  %2107 = vmatprep.mubr.msk.bf16.mxu1 %vm2409_vm0, %v2408_v0 }
0x108d   :  { %2098 = vmatpush3.bf16.msra.mxu0 %v2496_v5  ;;  %2106 = vmatpush3.bf16.msra.mxu1 %v2528_v31 }
0x108e   :  { %2111 = vmatprep.subr.bf16.mxu0 %v2408_v0  ;;  %2119 = vmatprep.subr.bf16.mxu1 %v2408_v0 }
0x1140   :  { %v1260_v3 = vpop.f32.mrf.mxu1 }
0x1141   :  { %v1267_v30 = vrot.slane %v1260_v3, 4 }
0x1142   :  { %v2077_v58 = vpop.f32.mrf.mxu1 }
0x1143   :  { %v1269_v59 = vadd.f32 %v1267_v30, %v2515_v12 }
0x1144   :  { %v1263_v60 = vpop.f32.mrf.mxu1 }
0x1145   :  { %2251 = vtanh.f32 %v1269_v59  ;;  %v1844_v13 = vmul.f32 -1.442695, %v1269_v59 }
0x1146   :  { %v2078_v61 = vpop.f32.mrf.mxu1 }
0x1148   :  { %v1338_v63 = vpop.f32.mrf.mxu0  ;;  %v1378_v62 = vpop.f32.mrf.mxu1 }
0x1149   :  { %v1379_v1 = vadd.f32 %v1378_v62, %v1338_v63 }
0x114a   :  { %v2085_v2 = vpop.f32.mrf.mxu0  ;;  %v2093_v4 = vpop.f32.mrf.mxu1 }
0x114b   :  { %v1384_v5 = vadd.f32 %v2567_v48, %v1379_v1 }
0x114c   :  { %v1341_v31 = vpop.f32.mrf.mxu0  ;;  %v1381_v6 = vpop.f32.mrf.mxu1 }
0x114d   :  { %2253 = vtanh.f32 %v1384_v5  ;;  %v1847_v14 = vmul.f32 -1.442695, %v1384_v5 }
0x114e   :  { %v2086_v7 = vpop.f32.mrf.mxu0  ;;  %v2094_v10 = vpop.f32.mrf.mxu1  ;;  %2255 = vpow2.f32 %v1844_v13 }
0x114f   :  { %2257 = vpow2.f32 %v1847_v14 }
0x1152   :  { %v2252_v11 = vpop.eup %2251 }
0x1153   :  { %1282 = vrot.lane.b32.xlu0 %v2252_v11, %s2403_s12 }
0x115a   :  { %v2254_v8 = vpop.eup %2253 }
0x115b   :  { %1394 = vrot.lane.b32.xlu1 %v2254_v8, %s2403_s12  ;;  %v2256_v15 = vpop.eup %2255 }
0x115c   :  { %v1273_v17 = vadd.f32 1.0, %v2256_v15  ;;  %v2258_v18 = vpop.eup %2257 }
0x115d   :  { %v1388_v19 = vadd.f32 1.0, %v2258_v18 }
0x115e   :  { %2259 = vrcp.f32 %v1273_v17 }
0x115f   :  { %2261 = vrcp.f32 %v1388_v19 }
0x116b   :  { %v2260_v16 = vpop.eup %2259 }
0x116c   :  { %v2262_v22 = vpop.eup %2261  ;;  %v1280_v26 = vmul.f32 %v2260_v16, %v1278_v25 }
0x116d   :  { %v1392_v29 = vmul.f32 %v2262_v22, %v2734_v45 }
0x11c5   :  { %v1283_v20 = vpop.permute.xlu0 %1282 }
0x11c6   :  { %v1285_v21 = vmul.f32 %v2260_v16, %v1283_v20 }
0x11c8   :  { %1287 = vrot.lane.b32.xlu0 %v1285_v21, %s2411_s3 }
0x11cd   :  { %v1395_v23 = vpop.permute.xlu1 %1394 }
0x11ce   :  { %v1397_v24 = vmul.f32 %v2262_v22, %v1395_v23 }
0x11d0   :  { %1399 = vrot.lane.b32.xlu1 %v1397_v24, %s2411_s3 }
0x123a   :  { %v1288_v27 = vpop.permute.xlu0 %1287 }
0x123b   :  { %v2769_v28 = vadd.f32 %v1288_v27, %v1280_v26 }
0x123d   :  { %2263 = vtanh.f32 %v2769_v28  ;;  %v1469_v8 = vrot.slane %v2769_v28, 6 }
0x1242   :  { %v1400_v32 = vpop.permute.xlu1 %1399 }
0x1243   :  { %v2773_v33 = vadd.f32 %v1400_v32, %v1392_v29 }
0x1245   :  { %2265 = vtanh.f32 %v2773_v33 }
0x124a   :  { %v2264_v34 = vpop.eup %2263 }
0x124b   :  { %1293 = vrot.lane.b32.xlu0 %v2264_v34, %s2403_s12 }
0x1252   :  { %v2266_v36 = vpop.eup %2265 }
0x1253   :  { %1405 = vrot.lane.b32.xlu1 %v2266_v36, %s2403_s12 }
0x12bd   :  { %v1294_v38 = vpop.permute.xlu0 %1293 }
0x12be   :  { %v1296_v39 = vmul.f32 %v2260_v16, %v1294_v38 }
0x12c0   :  { %v1409_v40 = vpack.c.bf16 %v1296_v39, %v1296_v39 }
0x12c2   :  { %v1411_v41 = vrot.slane %v1409_v40, 2 }
0x12c4   :  { %1412 = vrot.lane.b32.xlu0 %v1411_v41, %s2411_s3  ;;  %v2293_v41 = vld [vmem:[%s2835_s6] ss:$0 sm:$0xff] }
0x12c5   :  { %v1406_v42 = vpop.permute.xlu1 %1405 }
0x12c6   :  { %v1408_v43 = vmul.f32 %v2262_v22, %v1406_v42 }
0x12c8   :  { %v1488_v9 = vpack.c.bf16 %v1408_v43, %v1408_v43 }
0x12ca   :  { %1490 = vrot.lane.b32.xlu1 %v1488_v9, %s2411_s3 }
0x1336   :  { %v1413_v44 = vpop.permute.xlu0 %1412 }
0x1337   :  { %2100 = vmatmul.mubr.msk.bf16.vlgmr.msra.gmra.mxu0 %vm182_vm3, %v1413_v44 }
0x1338   :  { %2112 = vmatpush3.bf16.msra.mxu0 %v2542_v35  ;;  %2115 = vmatprep.mubr.msk.bf16.mxu0 %vm2409_vm0, %v2408_v0 }
0x1339   :  { %2113 = vmatprep.subr.bf16.mxu0 %v2408_v0 }
0x133c   :  { %2114 = vmatpush3.bf16.msra.mxu0 %v2549_v37  ;;  %v1491_v45 = vpop.permute.xlu1 %1490 }
0x133d   :  { %2108 = vmatmul.mubr.msk.bf16.vlgmr.msra.gmra.mxu1 %vm182_vm3, %v1491_v45  ;;  %2127 = vmatprep.subr.bf16.mxu0 %v2408_v0 }
0x133e   :  { %2120 = vmatpush3.bf16.msra.mxu1 %v2291_v46  ;;  %2123 = vmatprep.mubr.msk.bf16.mxu1 %vm2409_vm0, %v2408_v0 }
0x133f   :  { %2116 = vmatmul.mubr.msk.bf16.vlgmr.msra.gmra.mxu0 %vm182_vm3, %v1413_v44  ;;  %2121 = vmatprep.subr.bf16.mxu1 %v2408_v0 }
0x1340   :  { %2128 = vmatpush3.bf16.msra.mxu0 %v2542_v35  ;;  %2131 = vmatprep.mubr.msk.bf16.mxu0 %vm2409_vm0, %v2408_v0 }
0x1341   :  { %2129 = vmatprep.subr.bf16.mxu0 %v2408_v0 }
0x1342   :  { %2122 = vmatpush3.bf16.msra.mxu1 %v2292_v47 }
0x1343   :  { %2135 = vmatprep.subr.bf16.mxu1 %v2408_v0 }
0x1344   :  { %2130 = vmatpush3.bf16.msra.mxu0 %v2549_v37 }
0x13f7   :  { %v1451_v49 = vpop.f32.mrf.mxu0 }
0x13f8   :  { %v1458_v50 = vrot.slane %v1451_v49, 2 }
0x13f9   :  { %v2101_v51 = vpop.f32.mrf.mxu0 }
0x13fa   :  { %v1460_v52 = vadd.f32 %v1458_v50, %v2515_v12 }
0x13fb   :  { %v1454_v53 = vpop.f32.mrf.mxu0 }
0x13fc   :  { %2267 = vtanh.f32 %v1460_v52  ;;  %v1849_v12 = vmul.f32 -1.442695, %v1460_v52 }
0x13fd   :  { %v2102_v55 = vpop.f32.mrf.mxu0  ;;  %v1529_v35 = vpop.f32.mrf.mxu1 }
0x13ff   :  { %v2109_v54 = vpop.f32.mrf.mxu1  ;;  %v1569_v56 = vpop.f32.mrf.mxu0 }
0x1400   :  { %v1570_v57 = vadd.f32 %v1569_v56, %v1529_v35  ;;  %v2161_v35 = vld [vmem:[#allocation8 + $0x8] sm:$0xff]   ;;  %v2162_v54 = vld [vmem:[#allocation8] sm:$0xff]  }
0x1401   :  { %v1532_v3 = vpop.f32.mrf.mxu1  ;;  %v2117_v30 = vpop.f32.mrf.mxu0 }
0x1402   :  { %v1575_v58 = vadd.f32 %v2567_v48, %v1570_v57 }
0x1403   :  { %v2110_v59 = vpop.f32.mrf.mxu1  ;;  %v1572_v60 = vpop.f32.mrf.mxu0 }
0x1404   :  { %2269 = vtanh.f32 %v1575_v58  ;;  %v1852_v62 = vmul.f32 -1.442695, %v1575_v58  ;;  %v1856_v59 = vld [vmem:[%s2837_s8] ss:$0 sm:$0xff] }
0x1405   :  { %v2118_v37 = vpop.f32.mrf.mxu0  ;;  %2271 = vpow2.f32 %v1849_v12 }
0x1406   :  { %2273 = vpow2.f32 %v1852_v62 }
0x1409   :  { %v2268_v61 = vpop.eup %2267 }
0x140a   :  { %1473 = vrot.lane.b32.xlu0 %v2268_v61, %s2403_s12 }
0x1411   :  { %v2270_v63 = vpop.eup %2269 }
0x1412   :  { %1585 = vrot.lane.b32.xlu1 %v2270_v63, %s2403_s12  ;;  %v2272_v1 = vpop.eup %2271 }
0x1413   :  { %v1464_v2 = vadd.f32 1.0, %v2272_v1  ;;  %v2274_v4 = vpop.eup %2273 }
0x1414   :  { %v1579_v5 = vadd.f32 1.0, %v2274_v4 }
0x1415   :  { %2275 = vrcp.f32 %v1464_v2 }
0x1416   :  { %2277 = vrcp.f32 %v1579_v5 }
0x1422   :  { %v2276_v48 = vpop.eup %2275 }
0x1423   :  { %v2278_v7 = vpop.eup %2277  ;;  %v1471_v13 = vmul.f32 %v2276_v48, %v1469_v8 }
0x1424   :  { %v1583_v17 = vmul.f32 %v2278_v7, %v2773_v33 }
0x147c   :  { %v1474_v31 = vpop.permute.xlu0 %1473 }
0x147d   :  { %v1476_v6 = vmul.f32 %v2276_v48, %v1474_v31 }
0x147f   :  { %1478 = vrot.lane.b32.xlu0 %v1476_v6, %s2411_s3 }
0x1484   :  { %v1586_v10 = vpop.permute.xlu1 %1585 }
0x1485   :  { %v1588_v11 = vmul.f32 %v2278_v7, %v1586_v10 }
0x1487   :  { %1590 = vrot.lane.b32.xlu1 %v1588_v11, %s2411_s3 }
0x14f1   :  { %v1479_v14 = vpop.permute.xlu0 %1478 }
0x14f2   :  { %v1481_v15 = vadd.f32 %v1479_v14, %v1471_v13 }
0x14f4   :  { %2279 = vtanh.f32 %v1481_v15 }
0x14f9   :  { %v1591_v18 = vpop.permute.xlu1 %1590 }
0x14fa   :  { %v1593_v19 = vadd.f32 %v1591_v18, %v1583_v17 }
0x14fc   :  { %2281 = vtanh.f32 %v1593_v19 }
0x1501   :  { %v2280_v16 = vpop.eup %2279 }
0x1502   :  { %1484 = vrot.lane.b32.xlu0 %v2280_v16, %s2403_s12 }
0x1509   :  { %v2282_v20 = vpop.eup %2281 }
0x150a   :  { %1596 = vrot.lane.b32.xlu1 %v2282_v20, %s2403_s12 }
0x1574   :  { %v1485_v21 = vpop.permute.xlu0 %1484 }
0x1575   :  { %v1487_v22 = vmul.f32 %v2276_v48, %v1485_v21 }
0x1577   :  { %v1600_v23 = vpack.c.bf16 %v1487_v22, %v1487_v22 }
0x1579   :  { %v1649_v24 = vrot.slane %v1600_v23, 3 }
0x157b   :  { %1650 = vrot.lane.b32.xlu1 %v1649_v24, %s2411_s3 }
0x157c   :  { %v1597_v25 = vpop.permute.xlu1 %1596 }
0x157d   :  { %v1599_v26 = vmul.f32 %v2278_v7, %v1597_v25 }
0x157f   :  { %v1601_v27 = vpack.c.bf16 %v1599_v26, %v1599_v26 }
0x1581   :  { %1603 = vrot.lane.b32.xlu0 %v1601_v27, %s2411_s3 }
0x15ed   :  { %v1651_v28 = vpop.permute.xlu1 %1650 }
0x15ee   :  { %2132 = vmatmul.mubr.msk.bf16.vlgmr.msra.gmra.mxu0 %vm182_vm3, %v1651_v28 }
0x15f3   :  { %v1604_v29 = vpop.permute.xlu0 %1603 }
0x15f4   :  { %2124 = vmatmul.mubr.msk.bf16.vlgmr.msra.gmra.mxu1 %vm182_vm3, %v1604_v29 }
0x15f5   :  { %2139 = vmatprep.mubr.msk.bf16.mxu1 %vm2409_vm0, %v2408_v0  ;;  %2136 = vmatpush3.bf16.msra.mxu1 %v2161_v35 }
0x15f6   :  { %2137 = vmatprep.subr.bf16.mxu1 %v2408_v0 }
0x15f9   :  { %2138 = vmatpush3.bf16.msra.mxu1 %v2162_v54 }
0x16ae   :  { %v1689_v32 = vpop.f32.mrf.mxu0 }
0x16b0   :  { %v2133_v33 = vpop.f32.mrf.mxu0 }
0x16b2   :  { %v1692_v34 = vpop.f32.mrf.mxu0 }
0x16b4   :  { %v1642_v36 = vpop.f32.mrf.mxu1  ;;  %v2134_v38 = vpop.f32.mrf.mxu0 }
0x16b5   :  { %v1690_v39 = vadd.f32 %v1689_v32, %v1642_v36 }
0x16b6   :  { %v2125_v40 = vpop.f32.mrf.mxu1 }
0x16b7   :  { %v1695_v42 = vadd.f32 %v2293_v41, %v1690_v39 }
0x16b8   :  { %v1645_v43 = vpop.f32.mrf.mxu1 }
0x16b9   :  { %2283 = vtanh.f32 %v1695_v42  ;;  %v1855_v45 = vmul.f32 -1.442695, %v1695_v42 }
0x16ba   :  { %v2126_v9 = vpop.f32.mrf.mxu1 }
0x16bb   :  { %2285 = vpow2.f32 %v1855_v45 }
0x16c6   :  { %v2284_v44 = vpop.eup %2283 }
0x16c7   :  { %1705 = vrot.lane.b32.xlu0 %v2284_v44, %s2403_s12 }
0x16c8   :  { %v2286_v46 = vpop.eup %2285 }
0x16c9   :  { %v1699_v47 = vadd.f32 1.0, %v2286_v46 }
0x16cb   :  { %2287 = vrcp.f32 %v1699_v47 }
0x16d8   :  { %v2288_v49 = vpop.eup %2287 }
0x16d9   :  { %v1703_v52 = vmul.f32 %v2288_v49, %v1593_v19 }
0x1739   :  { %v1706_v50 = vpop.permute.xlu0 %1705 }
0x173a   :  { %v1708_v51 = vmul.f32 %v2288_v49, %v1706_v50 }
0x173c   :  { %1710 = vrot.lane.b32.xlu1 %v1708_v51, %s2411_s3 }
0x17ae   :  { %v1711_v53 = vpop.permute.xlu1 %1710 }
0x17af   :  { %v1713_v55 = vadd.f32 %v1711_v53, %v1703_v52 }
0x17b1   :  { %2289 = vtanh.f32 %v1713_v55 }
0x17be   :  { %v2290_v56 = vpop.eup %2289 }
0x17bf   :  { %1716 = vrot.lane.b32.xlu0 %v2290_v56, %s2403_s12  ;;  %s2374_s12 = scalar_lea.vmem %s1798_s19, 32 }
0x17c0   :  { %p2375_p6 = scmp.ne.s32.totalorder %s1798_s19, %s2374_s12  ;;  %p2380_p8 = scmp.lt.s32.totalorder %s2374_s12, %s2374_s12 }
0x17c2   :  { %p2381_p9 = por %p2380_p8, %p2379_p7 }
0x17c4   :  { %p2382_p10 = pnand %p2381_p9, %p2375_p6 }
0x1831   :  { %v1717_v57 = vpop.permute.xlu0 %1716 }
0x1832   :  { %v1719_v3 = vmul.f32 %v2288_v49, %v1717_v57 }
0x1834   :  { %v1720_v30 = vpack.c.bf16 %v1719_v3, %v1719_v3 }
0x1836   :  { %1733 = vrot.lane.b32.xlu1 %v1720_v30, %s2411_s3 }
0x18a8   :  { %v1734_v58 = vpop.permute.xlu1 %1733 }
0x18a9   :  { %2140 = vmatmul.mubr.msk.bf16.vlgmr.msra.gmra.mxu1 %vm182_vm3, %v1734_v58 }
0x1969   :  { %v1784_v60 = vpop.f32.mrf.mxu1 }
0x196a   :  { %v1785_v0 = vadd.f32 %v1856_v59, %v1784_v60 }
0x196b   :  { %v2141_v37 = vpop.f32.mrf.mxu1 }
0x196c   :  { %1790 = vst [vmem:[#allocation10] sm:$0x3] %v1785_v0 }
0x196d   :  { %v1787_v61 = vpop.f32.mrf.mxu1 }
0x196e   :  { %2385 = shalt.err (!%p2382_p10)
}
0x196f   :  { %1800 = dma.vmem_to_hbm [thread:$0]  %s1798_s19, 32, %s2838_s9, [#allocation4]   ;;  %v2142_v63 = vpop.f32.mrf.mxu1 }
0x1970   :  { %2400 = dma.done.wait [#allocation4], 32  }
0x1971   :  { %2401 = vsyncadd [#allocation4], 4294967264 }
0x1972   :  { %1804 = vsyncpa [#allocation3], 1 }
0x1973   :  { %1805 = vsyncpa [#allocation6], 1 }
0x1974   :  { %1806 = vsyncpa [#allocation9], 1 }
0x1975   :  { %1807 = vsyncpa [#allocation4], 1 }

</bundles_post_ra>
